<compile_context>
chip_gen: v7x
topology: tpu7x:2x2x1
jax: 0.10.0
libtpu: 0.0.40
codegen_flags: <defaults>
</compile_context>

<pallas_src>
import functools
import math

import jax
import jax.numpy as jnp
from jax.experimental import pallas as pl
from jax.experimental.pallas import tpu as pltpu


def _round_up(x, m):
    return ((x + m - 1) // m) * m


def kan_linear_kernel(x_ref, knots_ref, recs_ref, w_ref, o_ref, *,
                      spline_order, fchunk):
    """One batch-row tile of KANLinear.forward.

    x_ref:     (tb, in_p)                      input rows (f32)
    knots_ref: (n_knots, in_p)                 spline grid, knot-major
    recs_ref:  (R, in_p)                       precomputed Cox-de Boor reciprocals
    w_ref:     (n_chunks, (1+C)*fchunk, out_p) packed [base | spline] weights, bf16
    o_ref:     (tb, out_p)                     output rows
    """
    n_knots = knots_ref.shape[0]
    in_p = x_ref.shape[1]
    n_chunks = in_p // fchunk

    acc = jnp.zeros((x_ref.shape[0], o_ref.shape[1]), jnp.float32)

    for g in range(n_chunks):
        c0 = g * fchunk
        x = x_ref[:, c0:c0 + fchunk].astype(jnp.float32)         # (tb, fchunk)
        kn = knots_ref[:, c0:c0 + fchunk].astype(jnp.float32)    # (n_knots, fchunk)
        rec = recs_ref[:, c0:c0 + fchunk].astype(jnp.float32)    # (R, fchunk)
        g_rows = [kn[j:j + 1, :] for j in range(n_knots)]        # (1, fchunk) rows

        # ---- base path activation: SiLU via EUP exp + approx EUP reciprocal ----
        silu = x * pl.reciprocal(1.0 + jnp.exp(-x), approx=True)

        # ---- level-0 bases: one compare per knot, reused for both ends ----
        ge = [x >= g_rows[j] for j in range(n_knots)]
        bases = [
            jnp.where(ge[j] & jnp.logical_not(ge[j + 1]), 1.0, 0.0)
            for j in range(n_knots - 1)
        ]

        # ---- Cox-de Boor recursion: divides replaced by precomputed recips ----
        r = 0
        for k in range(1, spline_order + 1):
            new_bases = []
            for j in range(len(bases) - 1):
                left = (x - g_rows[j]) * rec[r:r + 1, :] * bases[j]
                right = (g_rows[j + k + 1] - x) * rec[r + 1:r + 2, :] * bases[j + 1]
                r += 2
                new_bases.append(left + right)
            bases = new_bases
        # len(bases) == grid_size + spline_order

        # ---- one fused deep-K bf16 MXU matmul for base + spline of this chunk ----
        slab = jnp.concatenate(
            [silu.astype(jnp.bfloat16)] + [b.astype(jnp.bfloat16) for b in bases],
            axis=1)                                              # (tb, (1+C)*fchunk)
        acc = acc + jnp.dot(slab, w_ref[g], preferred_element_type=jnp.float32)

    o_ref[...] = acc.astype(o_ref.dtype)


def _feature_chunk(in_p):
    # Chunk the in-feature axis for wide layers so the live Cox-de Boor slices
    # stay bounded; narrow (<=256) layers use a single chunk.
    if in_p <= 256:
        return in_p
    return 256 if in_p % 256 == 0 else 128


def _vmem_limit_bytes():
    # v7x: 64 MiB physical VMEM per core -> cap the scoped limit at 48 MiB.
    # v5e/v6e: 128 MiB physical -> raise the scoped default to 96 MiB.
    try:
        kind = jax.devices()[0].device_kind.lower()
    except Exception:
        kind = ""
    return (48 << 20) if "v7" in kind else (96 << 20)


def _default_block_rows(batch, in_p, out_p, n_knots, n_coeff, n_rec, fchunk,
                        vmem_limit):
    # Resident (grid-invariant, constant index_map) operands (x2 for buffering).
    resident = 2 * ((1 + n_coeff) * in_p * out_p * 2            # packed bf16 weights
                    + (n_knots + n_rec) * in_p * 4)             # knots + reciprocals
    # Streamed tiles plus compute scratch, per batch row.
    per_row = (2 * in_p * 4                   # x tile, double-buffered
               + 2 * out_p * 4                # out tile, double-buffered
               + 2 * n_knots * fchunk * 4     # live basis slices during recursion
               + (1 + n_coeff) * fchunk * 2   # bf16 slab
               + 2 * out_p * 4)               # f32 accumulator + headroom
    budget = vmem_limit - resident - (4 << 20)
    tb = 128
    if budget > 128 * per_row:
        tb = max(128, min(512, (budget // per_row // 128) * 128))
    rb = max(8, _round_up(batch, 8))
    tb = min(tb, rb)
    # v7x has two TensorCores: prefer >= 2 grid steps when the batch allows a
    # tile that is still >= 128 rows.
    if tb == rb and rb >= 256:
        tb = min(rb, max(128, _round_up(rb // 2, 128)))
    return tb


@functools.partial(jax.jit, static_argnames=("spline_order", "block_rows"))
def kan_linear(x, knots, base_weight, spline_weight, spline_scaler,
               *, spline_order=3, block_rows=None):
    """KANLinear.forward for x of shape (batch, in_features)."""
    batch, in_features = x.shape
    out_features = base_weight.shape[0]
    n_knots = knots.shape[1]
    n_coeff = spline_weight.shape[-1]                 # grid_size + spline_order

    in_p = _round_up(in_features, 128)
    out_p = _round_up(out_features, 128)
    fchunk = _feature_chunk(in_p)
    n_chunks = in_p // fchunk

    # ---- one-time wrapper prep: padding, scaler fold, packing, casts ----
    # knots: knot-major; padded feature columns *replicate* a valid increasing
    # knot vector (zero knots would give 0/0 -> NaN in the recursion).
    knots_t = knots.astype(jnp.float32).T                          # (n_knots, in)
    if in_p > in_features:
        pad_cols = jnp.broadcast_to(knots_t[:, :1],
                                    (n_knots, in_p - in_features))
        knots_t = jnp.concatenate([knots_t, pad_cols], axis=1)     # (n_knots, in_p)

    # Cox-de Boor denominator reciprocals (k-major, then j, left/right pairs).
    rec_rows = []
    for k in range(1, spline_order + 1):
        for j in range(n_knots - 1 - k):
            rec_rows.append(1.0 / (knots_t[j + k] - knots_t[j]))
            rec_rows.append(1.0 / (knots_t[j + k + 1] - knots_t[j + 1]))
    recs = jnp.stack(rec_rows, axis=0)                              # (R, in_p)
    n_rec = recs.shape[0]

    # Packed [base | spline-coeff-0 .. C-1] weights per feature chunk,
    # lane-padded output columns, bf16 operands for MXU throughput.
    wb = jnp.pad(base_weight.astype(jnp.float32),
                 ((0, out_p - out_features), (0, in_p - in_features)))
    ssw = (spline_weight.astype(jnp.float32)
           * spline_scaler.astype(jnp.float32)[:, :, None])        # (out, in, C)
    ssw = jnp.pad(ssw, ((0, out_p - out_features),
                        (0, in_p - in_features), (0, 0)))           # (out_p, in_p, C)
    wb_c = wb.T.reshape(n_chunks, 1, fchunk, out_p)
    ws_c = (jnp.transpose(ssw, (2, 1, 0))                           # (C, in_p, out_p)
            .reshape(n_coeff, n_chunks, fchunk, out_p)
            .transpose(1, 0, 2, 3))                                 # (nc, C, fchunk, out_p)
    w = jnp.concatenate([wb_c, ws_c], axis=1).reshape(
        n_chunks, (1 + n_coeff) * fchunk, out_p).astype(jnp.bfloat16)

    xp = x
    if in_p > in_features:
        xp = jnp.pad(xp, ((0, 0), (0, in_p - in_features)))

    vmem_limit = _vmem_limit_bytes()
    tb = (block_rows if block_rows is not None else
          _default_block_rows(batch, in_p, out_p, n_knots, n_coeff, n_rec,
                              fchunk, vmem_limit))
    padded = _round_up(batch, tb)
    if padded > batch:
        xp = jnp.pad(xp, ((0, padded - batch), (0, 0)))

    kernel = functools.partial(kan_linear_kernel, spline_order=spline_order,
                               fchunk=fchunk)

    # TODO(synk): single-buffer the three grid-invariant operands below via
    # pipeline_mode=pl.Buffered(1) once confirmed on the target JAX build;
    # their constant index_maps already mean they are only DMA'd once.
    out = pl.pallas_call(
        kernel,
        out_shape=jax.ShapeDtypeStruct((padded, out_p), x.dtype),
        grid_spec=pltpu.PrefetchScalarGridSpec(
            num_scalar_prefetch=0,
            grid=(padded // tb,),
            in_specs=[
                pl.BlockSpec((tb, in_p), lambda i: (i, 0)),
                pl.BlockSpec((n_knots, in_p), lambda i: (0, 0)),
                pl.BlockSpec((n_rec, in_p), lambda i: (0, 0)),
                pl.BlockSpec((n_chunks, (1 + n_coeff) * fchunk, out_p),
                             lambda i: (0, 0, 0)),
            ],
            out_specs=pl.BlockSpec((tb, out_p), lambda i: (i, 0)),
        ),
        compiler_params=pltpu.CompilerParams(
            dimension_semantics=("parallel",),
            vmem_limit_bytes=vmem_limit,
        ),
    )(xp, knots_t, recs, w)
    return out[:batch, :out_features]


# ----------------------- pure-JAX reference -----------------------
def reference_b_splines(x, knots, spline_order):
    xe = x[:, :, None]
    bases = ((xe >= knots[:, :-1]) & (xe < knots[:, 1:])).astype(x.dtype)
    for k in range(1, spline_order + 1):
        bases = (
            (xe - knots[:, : -(k + 1)])
            / (knots[:, k:-1] - knots[:, : -(k + 1)])
            * bases[:, :, :-1]
            + (knots[:, k + 1:] - xe)
            / (knots[:, k + 1:] - knots[:, 1:-k])
            * bases[:, :, 1:]
        )
    return bases


def reference_kan_linear(x, knots, base_weight, spline_weight, spline_scaler,
                         spline_order):
    xf = x.astype(jnp.float32)
    silu = xf * jax.nn.sigmoid(xf)
    base_out = jnp.dot(silu, base_weight.T, precision=jax.lax.Precision.HIGHEST)
    bases = reference_b_splines(xf, knots, spline_order)          # (B, in, C)
    ssw = spline_weight * spline_scaler[:, :, None]               # (out, in, C)
    spline_out = jnp.dot(
        bases.reshape(x.shape[0], -1),
        ssw.reshape(ssw.shape[0], -1).T,
        precision=jax.lax.Precision.HIGHEST,
    )
    return (base_out + spline_out).astype(x.dtype)


if __name__ == "__main__":
    batch, in_features, out_features = 16, 32, 64
    grid_size, spline_order = 5, 3
    grid_range = (-1.0, 1.0)

    key = jax.random.PRNGKey(0)
    kx, kb, ks, kc = jax.random.split(key, 4)
    x = jax.random.normal(kx, (batch, in_features), dtype=jnp.float32)

    bound = 1.0 / math.sqrt(in_features)
    base_weight = jax.random.uniform(
        kb, (out_features, in_features), jnp.float32, -bound, bound)
    spline_weight = 0.1 * jax.random.normal(
        ks, (out_features, in_features, grid_size + spline_order),
        dtype=jnp.float32)
    spline_scaler = jax.random.uniform(
        kc, (out_features, in_features), jnp.float32, -bound, bound)

    # Module's registered grid buffer: uniform knots expanded per feature.
    h = (grid_range[1] - grid_range[0]) / grid_size
    knots_1d = (jnp.arange(-spline_order, grid_size + spline_order + 1,
                           dtype=jnp.float32) * h + grid_range[0])
    knots = jnp.broadcast_to(knots_1d, (in_features, knots_1d.shape[0]))

    out = kan_linear(x, knots, base_weight, spline_weight, spline_scaler,
                     spline_order=spline_order)
    out = jax.block_until_ready(out)

    ref = reference_kan_linear(x, knots, base_weight, spline_weight,
                               spline_scaler, spline_order)
    assert out.shape == (batch, out_features)
    err = float(jnp.max(jnp.abs(out - ref)))
    tol = 2e-2 * (1.0 + float(jnp.max(jnp.abs(ref))))
    assert err <= tol, (err, tol)

    print("KERNEL_OK")
</pallas_src>

<mosaic_0001>
module attributes {stable_mosaic.version = 11 : i64} {
  func.func @kan_linear_kernel(%arg0: i32, %arg1: memref<16x128xf32, #tpu.memory_space<vmem>>, %arg2: memref<12x128xf32, #tpu.memory_space<vmem>>, %arg3: memref<54x128xf32, #tpu.memory_space<vmem>>, %arg4: memref<1x1152x128xbf16, #tpu.memory_space<vmem>>, %arg5: memref<16x128xf32, #tpu.memory_space<vmem>>) attributes {dimension_semantics = [#tpu.dimension_semantics<parallel>], iteration_bounds = array<i64: 1>, scalar_prefetch = 0 : i64, scratch_operands = 0 : i64, tpu.core_type = #tpu.core_type<tc>, window_params = [{transform_indices = @transform_0, window_bounds = array<i64: 16, 128>}, {pipeline_mode = #tpu.pipeline_mode<synchronous>, transform_indices = @transform_1, window_bounds = array<i64: 12, 128>}, {pipeline_mode = #tpu.pipeline_mode<synchronous>, transform_indices = @transform_2, window_bounds = array<i64: 54, 128>}, {pipeline_mode = #tpu.pipeline_mode<synchronous>, transform_indices = @transform_3, window_bounds = array<i64: 1, 1152, 128>}, {transform_indices = @transform_4, window_bounds = array<i64: 16, 128>}]} {
    %cst = arith.constant 0.000000e+00 : f32
    %0 = vector.broadcast %cst : f32 to vector<16x128xf32>
    %c0 = arith.constant 0 : index
    %c0_0 = arith.constant 0 : index
    %1 = vector.load %arg1[%c0, %c0_0] : memref<16x128xf32, #tpu.memory_space<vmem>>, vector<16x128xf32>
    %c0_1 = arith.constant 0 : index
    %c0_2 = arith.constant 0 : index
    %2 = vector.load %arg2[%c0_1, %c0_2] : memref<12x128xf32, #tpu.memory_space<vmem>>, vector<12x128xf32>
    %c0_3 = arith.constant 0 : index
    %c0_4 = arith.constant 0 : index
    %3 = vector.load %arg3[%c0_3, %c0_4] : memref<54x128xf32, #tpu.memory_space<vmem>>, vector<54x128xf32>
    %4 = vector.extract_strided_slice %2 {offsets = [0, 0], sizes = [1, 128], strides = [1, 1]} : vector<12x128xf32> to vector<1x128xf32>
    %5 = vector.extract_strided_slice %2 {offsets = [1, 0], sizes = [1, 128], strides = [1, 1]} : vector<12x128xf32> to vector<1x128xf32>
    %6 = vector.extract_strided_slice %2 {offsets = [2, 0], sizes = [1, 128], strides = [1, 1]} : vector<12x128xf32> to vector<1x128xf32>
    %7 = vector.extract_strided_slice %2 {offsets = [3, 0], sizes = [1, 128], strides = [1, 1]} : vector<12x128xf32> to vector<1x128xf32>
    %8 = vector.extract_strided_slice %2 {offsets = [4, 0], sizes = [1, 128], strides = [1, 1]} : vector<12x128xf32> to vector<1x128xf32>
    %9 = vector.extract_strided_slice %2 {offsets = [5, 0], sizes = [1, 128], strides = [1, 1]} : vector<12x128xf32> to vector<1x128xf32>
    %10 = vector.extract_strided_slice %2 {offsets = [6, 0], sizes = [1, 128], strides = [1, 1]} : vector<12x128xf32> to vector<1x128xf32>
    %11 = vector.extract_strided_slice %2 {offsets = [7, 0], sizes = [1, 128], strides = [1, 1]} : vector<12x128xf32> to vector<1x128xf32>
    %12 = vector.extract_strided_slice %2 {offsets = [8, 0], sizes = [1, 128], strides = [1, 1]} : vector<12x128xf32> to vector<1x128xf32>
    %13 = vector.extract_strided_slice %2 {offsets = [9, 0], sizes = [1, 128], strides = [1, 1]} : vector<12x128xf32> to vector<1x128xf32>
    %14 = vector.extract_strided_slice %2 {offsets = [10, 0], sizes = [1, 128], strides = [1, 1]} : vector<12x128xf32> to vector<1x128xf32>
    %15 = vector.extract_strided_slice %2 {offsets = [11, 0], sizes = [1, 128], strides = [1, 1]} : vector<12x128xf32> to vector<1x128xf32>
    %cst_5 = arith.constant 0.000000e+00 : f32
    %16 = vector.broadcast %cst_5 : f32 to vector<16x128xf32>
    %17 = arith.subf %16, %1 : vector<16x128xf32>
    %18 = math.exp %17 : vector<16x128xf32>
    %cst_6 = arith.constant 1.000000e+00 : f32
    %19 = vector.broadcast %cst_6 : f32 to vector<16x128xf32>
    %20 = arith.addf %19, %18 : vector<16x128xf32>
    %21 = tpu.reciprocal %20 {approx = true} : vector<16x128xf32> -> vector<16x128xf32>
    %22 = arith.mulf %1, %21 : vector<16x128xf32>
    %23 = vector.broadcast %4 : vector<1x128xf32> to vector<16x128xf32>
    %24 = arith.cmpf oge, %1, %23 : vector<16x128xf32>
    %25 = vector.broadcast %5 : vector<1x128xf32> to vector<16x128xf32>
    %26 = arith.cmpf oge, %1, %25 : vector<16x128xf32>
    %27 = vector.broadcast %6 : vector<1x128xf32> to vector<16x128xf32>
    %28 = arith.cmpf oge, %1, %27 : vector<16x128xf32>
    %29 = vector.broadcast %7 : vector<1x128xf32> to vector<16x128xf32>
    %30 = arith.cmpf oge, %1, %29 : vector<16x128xf32>
    %31 = vector.broadcast %8 : vector<1x128xf32> to vector<16x128xf32>
    %32 = arith.cmpf oge, %1, %31 : vector<16x128xf32>
    %33 = vector.broadcast %9 : vector<1x128xf32> to vector<16x128xf32>
    %34 = arith.cmpf oge, %1, %33 : vector<16x128xf32>
    %35 = vector.broadcast %10 : vector<1x128xf32> to vector<16x128xf32>
    %36 = arith.cmpf oge, %1, %35 : vector<16x128xf32>
    %37 = vector.broadcast %11 : vector<1x128xf32> to vector<16x128xf32>
    %38 = arith.cmpf oge, %1, %37 : vector<16x128xf32>
    %39 = vector.broadcast %12 : vector<1x128xf32> to vector<16x128xf32>
    %40 = arith.cmpf oge, %1, %39 : vector<16x128xf32>
    %41 = vector.broadcast %13 : vector<1x128xf32> to vector<16x128xf32>
    %42 = arith.cmpf oge, %1, %41 : vector<16x128xf32>
    %43 = vector.broadcast %14 : vector<1x128xf32> to vector<16x128xf32>
    %44 = arith.cmpf oge, %1, %43 : vector<16x128xf32>
    %45 = vector.broadcast %15 : vector<1x128xf32> to vector<16x128xf32>
    %46 = arith.cmpf oge, %1, %45 : vector<16x128xf32>
    %cst_7 = arith.constant dense<true> : vector<16x128xi1>
    %47 = arith.xori %26, %cst_7 : vector<16x128xi1>
    %48 = arith.andi %24, %47 : vector<16x128xi1>
    %cst_8 = arith.constant 1.000000e+00 : f32
    %cst_9 = arith.constant 0.000000e+00 : f32
    %49 = vector.broadcast %cst_8 : f32 to vector<16x128xf32>
    %50 = vector.broadcast %cst_9 : f32 to vector<16x128xf32>
    %51 = arith.select %48, %49, %50 : vector<16x128xi1>, vector<16x128xf32>
    %cst_10 = arith.constant dense<true> : vector<16x128xi1>
    %52 = arith.xori %28, %cst_10 : vector<16x128xi1>
    %53 = arith.andi %26, %52 : vector<16x128xi1>
    %cst_11 = arith.constant 1.000000e+00 : f32
    %cst_12 = arith.constant 0.000000e+00 : f32
    %54 = vector.broadcast %cst_11 : f32 to vector<16x128xf32>
    %55 = vector.broadcast %cst_12 : f32 to vector<16x128xf32>
    %56 = arith.select %53, %54, %55 : vector<16x128xi1>, vector<16x128xf32>
    %cst_13 = arith.constant dense<true> : vector<16x128xi1>
    %57 = arith.xori %30, %cst_13 : vector<16x128xi1>
    %58 = arith.andi %28, %57 : vector<16x128xi1>
    %cst_14 = arith.constant 1.000000e+00 : f32
    %cst_15 = arith.constant 0.000000e+00 : f32
    %59 = vector.broadcast %cst_14 : f32 to vector<16x128xf32>
    %60 = vector.broadcast %cst_15 : f32 to vector<16x128xf32>
    %61 = arith.select %58, %59, %60 : vector<16x128xi1>, vector<16x128xf32>
    %cst_16 = arith.constant dense<true> : vector<16x128xi1>
    %62 = arith.xori %32, %cst_16 : vector<16x128xi1>
    %63 = arith.andi %30, %62 : vector<16x128xi1>
    %cst_17 = arith.constant 1.000000e+00 : f32
    %cst_18 = arith.constant 0.000000e+00 : f32
    %64 = vector.broadcast %cst_17 : f32 to vector<16x128xf32>
    %65 = vector.broadcast %cst_18 : f32 to vector<16x128xf32>
    %66 = arith.select %63, %64, %65 : vector<16x128xi1>, vector<16x128xf32>
    %cst_19 = arith.constant dense<true> : vector<16x128xi1>
    %67 = arith.xori %34, %cst_19 : vector<16x128xi1>
    %68 = arith.andi %32, %67 : vector<16x128xi1>
    %cst_20 = arith.constant 1.000000e+00 : f32
    %cst_21 = arith.constant 0.000000e+00 : f32
    %69 = vector.broadcast %cst_20 : f32 to vector<16x128xf32>
    %70 = vector.broadcast %cst_21 : f32 to vector<16x128xf32>
    %71 = arith.select %68, %69, %70 : vector<16x128xi1>, vector<16x128xf32>
    %cst_22 = arith.constant dense<true> : vector<16x128xi1>
    %72 = arith.xori %36, %cst_22 : vector<16x128xi1>
    %73 = arith.andi %34, %72 : vector<16x128xi1>
    %cst_23 = arith.constant 1.000000e+00 : f32
    %cst_24 = arith.constant 0.000000e+00 : f32
    %74 = vector.broadcast %cst_23 : f32 to vector<16x128xf32>
    %75 = vector.broadcast %cst_24 : f32 to vector<16x128xf32>
    %76 = arith.select %73, %74, %75 : vector<16x128xi1>, vector<16x128xf32>
    %cst_25 = arith.constant dense<true> : vector<16x128xi1>
    %77 = arith.xori %38, %cst_25 : vector<16x128xi1>
    %78 = arith.andi %36, %77 : vector<16x128xi1>
    %cst_26 = arith.constant 1.000000e+00 : f32
    %cst_27 = arith.constant 0.000000e+00 : f32
    %79 = vector.broadcast %cst_26 : f32 to vector<16x128xf32>
    %80 = vector.broadcast %cst_27 : f32 to vector<16x128xf32>
    %81 = arith.select %78, %79, %80 : vector<16x128xi1>, vector<16x128xf32>
    %cst_28 = arith.constant dense<true> : vector<16x128xi1>
    %82 = arith.xori %40, %cst_28 : vector<16x128xi1>
    %83 = arith.andi %38, %82 : vector<16x128xi1>
    %cst_29 = arith.constant 1.000000e+00 : f32
    %cst_30 = arith.constant 0.000000e+00 : f32
    %84 = vector.broadcast %cst_29 : f32 to vector<16x128xf32>
    %85 = vector.broadcast %cst_30 : f32 to vector<16x128xf32>
    %86 = arith.select %83, %84, %85 : vector<16x128xi1>, vector<16x128xf32>
    %cst_31 = arith.constant dense<true> : vector<16x128xi1>
    %87 = arith.xori %42, %cst_31 : vector<16x128xi1>
    %88 = arith.andi %40, %87 : vector<16x128xi1>
    %cst_32 = arith.constant 1.000000e+00 : f32
    %cst_33 = arith.constant 0.000000e+00 : f32
    %89 = vector.broadcast %cst_32 : f32 to vector<16x128xf32>
    %90 = vector.broadcast %cst_33 : f32 to vector<16x128xf32>
    %91 = arith.select %88, %89, %90 : vector<16x128xi1>, vector<16x128xf32>
    %cst_34 = arith.constant dense<true> : vector<16x128xi1>
    %92 = arith.xori %44, %cst_34 : vector<16x128xi1>
    %93 = arith.andi %42, %92 : vector<16x128xi1>
    %cst_35 = arith.constant 1.000000e+00 : f32
    %cst_36 = arith.constant 0.000000e+00 : f32
    %94 = vector.broadcast %cst_35 : f32 to vector<16x128xf32>
    %95 = vector.broadcast %cst_36 : f32 to vector<16x128xf32>
    %96 = arith.select %93, %94, %95 : vector<16x128xi1>, vector<16x128xf32>
    %cst_37 = arith.constant dense<true> : vector<16x128xi1>
    %97 = arith.xori %46, %cst_37 : vector<16x128xi1>
    %98 = arith.andi %44, %97 : vector<16x128xi1>
    %cst_38 = arith.constant 1.000000e+00 : f32
    %cst_39 = arith.constant 0.000000e+00 : f32
    %99 = vector.broadcast %cst_38 : f32 to vector<16x128xf32>
    %100 = vector.broadcast %cst_39 : f32 to vector<16x128xf32>
    %101 = arith.select %98, %99, %100 : vector<16x128xi1>, vector<16x128xf32>
    %102 = vector.broadcast %4 : vector<1x128xf32> to vector<16x128xf32>
    %103 = arith.subf %1, %102 : vector<16x128xf32>
    %104 = vector.extract_strided_slice %3 {offsets = [0, 0], sizes = [1, 128], strides = [1, 1]} : vector<54x128xf32> to vector<1x128xf32>
    %105 = vector.broadcast %104 : vector<1x128xf32> to vector<16x128xf32>
    %106 = arith.mulf %103, %105 : vector<16x128xf32>
    %107 = arith.mulf %106, %51 : vector<16x128xf32>
    %108 = vector.broadcast %6 : vector<1x128xf32> to vector<16x128xf32>
    %109 = arith.subf %108, %1 : vector<16x128xf32>
    %110 = vector.extract_strided_slice %3 {offsets = [1, 0], sizes = [1, 128], strides = [1, 1]} : vector<54x128xf32> to vector<1x128xf32>
    %111 = vector.broadcast %110 : vector<1x128xf32> to vector<16x128xf32>
    %112 = arith.mulf %109, %111 : vector<16x128xf32>
    %113 = arith.mulf %112, %56 : vector<16x128xf32>
    %114 = arith.addf %107, %113 : vector<16x128xf32>
    %115 = vector.broadcast %5 : vector<1x128xf32> to vector<16x128xf32>
    %116 = arith.subf %1, %115 : vector<16x128xf32>
    %117 = vector.extract_strided_slice %3 {offsets = [2, 0], sizes = [1, 128], strides = [1, 1]} : vector<54x128xf32> to vector<1x128xf32>
    %118 = vector.broadcast %117 : vector<1x128xf32> to vector<16x128xf32>
    %119 = arith.mulf %116, %118 : vector<16x128xf32>
    %120 = arith.mulf %119, %56 : vector<16x128xf32>
    %121 = vector.broadcast %7 : vector<1x128xf32> to vector<16x128xf32>
    %122 = arith.subf %121, %1 : vector<16x128xf32>
    %123 = vector.extract_strided_slice %3 {offsets = [3, 0], sizes = [1, 128], strides = [1, 1]} : vector<54x128xf32> to vector<1x128xf32>
    %124 = vector.broadcast %123 : vector<1x128xf32> to vector<16x128xf32>
    %125 = arith.mulf %122, %124 : vector<16x128xf32>
    %126 = arith.mulf %125, %61 : vector<16x128xf32>
    %127 = arith.addf %120, %126 : vector<16x128xf32>
    %128 = vector.broadcast %6 : vector<1x128xf32> to vector<16x128xf32>
    %129 = arith.subf %1, %128 : vector<16x128xf32>
    %130 = vector.extract_strided_slice %3 {offsets = [4, 0], sizes = [1, 128], strides = [1, 1]} : vector<54x128xf32> to vector<1x128xf32>
    %131 = vector.broadcast %130 : vector<1x128xf32> to vector<16x128xf32>
    %132 = arith.mulf %129, %131 : vector<16x128xf32>
    %133 = arith.mulf %132, %61 : vector<16x128xf32>
    %134 = vector.broadcast %8 : vector<1x128xf32> to vector<16x128xf32>
    %135 = arith.subf %134, %1 : vector<16x128xf32>
    %136 = vector.extract_strided_slice %3 {offsets = [5, 0], sizes = [1, 128], strides = [1, 1]} : vector<54x128xf32> to vector<1x128xf32>
    %137 = vector.broadcast %136 : vector<1x128xf32> to vector<16x128xf32>
    %138 = arith.mulf %135, %137 : vector<16x128xf32>
    %139 = arith.mulf %138, %66 : vector<16x128xf32>
    %140 = arith.addf %133, %139 : vector<16x128xf32>
    %141 = vector.broadcast %7 : vector<1x128xf32> to vector<16x128xf32>
    %142 = arith.subf %1, %141 : vector<16x128xf32>
    %143 = vector.extract_strided_slice %3 {offsets = [6, 0], sizes = [1, 128], strides = [1, 1]} : vector<54x128xf32> to vector<1x128xf32>
    %144 = vector.broadcast %143 : vector<1x128xf32> to vector<16x128xf32>
    %145 = arith.mulf %142, %144 : vector<16x128xf32>
    %146 = arith.mulf %145, %66 : vector<16x128xf32>
    %147 = vector.broadcast %9 : vector<1x128xf32> to vector<16x128xf32>
    %148 = arith.subf %147, %1 : vector<16x128xf32>
    %149 = vector.extract_strided_slice %3 {offsets = [7, 0], sizes = [1, 128], strides = [1, 1]} : vector<54x128xf32> to vector<1x128xf32>
    %150 = vector.broadcast %149 : vector<1x128xf32> to vector<16x128xf32>
    %151 = arith.mulf %148, %150 : vector<16x128xf32>
    %152 = arith.mulf %151, %71 : vector<16x128xf32>
    %153 = arith.addf %146, %152 : vector<16x128xf32>
    %154 = vector.broadcast %8 : vector<1x128xf32> to vector<16x128xf32>
    %155 = arith.subf %1, %154 : vector<16x128xf32>
    %156 = vector.extract_strided_slice %3 {offsets = [8, 0], sizes = [1, 128], strides = [1, 1]} : vector<54x128xf32> to vector<1x128xf32>
    %157 = vector.broadcast %156 : vector<1x128xf32> to vector<16x128xf32>
    %158 = arith.mulf %155, %157 : vector<16x128xf32>
    %159 = arith.mulf %158, %71 : vector<16x128xf32>
    %160 = vector.broadcast %10 : vector<1x128xf32> to vector<16x128xf32>
    %161 = arith.subf %160, %1 : vector<16x128xf32>
    %162 = vector.extract_strided_slice %3 {offsets = [9, 0], sizes = [1, 128], strides = [1, 1]} : vector<54x128xf32> to vector<1x128xf32>
    %163 = vector.broadcast %162 : vector<1x128xf32> to vector<16x128xf32>
    %164 = arith.mulf %161, %163 : vector<16x128xf32>
    %165 = arith.mulf %164, %76 : vector<16x128xf32>
    %166 = arith.addf %159, %165 : vector<16x128xf32>
    %167 = vector.broadcast %9 : vector<1x128xf32> to vector<16x128xf32>
    %168 = arith.subf %1, %167 : vector<16x128xf32>
    %169 = vector.extract_strided_slice %3 {offsets = [10, 0], sizes = [1, 128], strides = [1, 1]} : vector<54x128xf32> to vector<1x128xf32>
    %170 = vector.broadcast %169 : vector<1x128xf32> to vector<16x128xf32>
    %171 = arith.mulf %168, %170 : vector<16x128xf32>
    %172 = arith.mulf %171, %76 : vector<16x128xf32>
    %173 = vector.broadcast %11 : vector<1x128xf32> to vector<16x128xf32>
    %174 = arith.subf %173, %1 : vector<16x128xf32>
    %175 = vector.extract_strided_slice %3 {offsets = [11, 0], sizes = [1, 128], strides = [1, 1]} : vector<54x128xf32> to vector<1x128xf32>
    %176 = vector.broadcast %175 : vector<1x128xf32> to vector<16x128xf32>
    %177 = arith.mulf %174, %176 : vector<16x128xf32>
    %178 = arith.mulf %177, %81 : vector<16x128xf32>
    %179 = arith.addf %172, %178 : vector<16x128xf32>
    %180 = vector.broadcast %10 : vector<1x128xf32> to vector<16x128xf32>
    %181 = arith.subf %1, %180 : vector<16x128xf32>
    %182 = vector.extract_strided_slice %3 {offsets = [12, 0], sizes = [1, 128], strides = [1, 1]} : vector<54x128xf32> to vector<1x128xf32>
    %183 = vector.broadcast %182 : vector<1x128xf32> to vector<16x128xf32>
    %184 = arith.mulf %181, %183 : vector<16x128xf32>
    %185 = arith.mulf %184, %81 : vector<16x128xf32>
    %186 = vector.broadcast %12 : vector<1x128xf32> to vector<16x128xf32>
    %187 = arith.subf %186, %1 : vector<16x128xf32>
    %188 = vector.extract_strided_slice %3 {offsets = [13, 0], sizes = [1, 128], strides = [1, 1]} : vector<54x128xf32> to vector<1x128xf32>
    %189 = vector.broadcast %188 : vector<1x128xf32> to vector<16x128xf32>
    %190 = arith.mulf %187, %189 : vector<16x128xf32>
    %191 = arith.mulf %190, %86 : vector<16x128xf32>
    %192 = arith.addf %185, %191 : vector<16x128xf32>
    %193 = vector.broadcast %11 : vector<1x128xf32> to vector<16x128xf32>
    %194 = arith.subf %1, %193 : vector<16x128xf32>
    %195 = vector.extract_strided_slice %3 {offsets = [14, 0], sizes = [1, 128], strides = [1, 1]} : vector<54x128xf32> to vector<1x128xf32>
    %196 = vector.broadcast %195 : vector<1x128xf32> to vector<16x128xf32>
    %197 = arith.mulf %194, %196 : vector<16x128xf32>
    %198 = arith.mulf %197, %86 : vector<16x128xf32>
    %199 = vector.broadcast %13 : vector<1x128xf32> to vector<16x128xf32>
    %200 = arith.subf %199, %1 : vector<16x128xf32>
    %201 = vector.extract_strided_slice %3 {offsets = [15, 0], sizes = [1, 128], strides = [1, 1]} : vector<54x128xf32> to vector<1x128xf32>
    %202 = vector.broadcast %201 : vector<1x128xf32> to vector<16x128xf32>
    %203 = arith.mulf %200, %202 : vector<16x128xf32>
    %204 = arith.mulf %203, %91 : vector<16x128xf32>
    %205 = arith.addf %198, %204 : vector<16x128xf32>
    %206 = vector.broadcast %12 : vector<1x128xf32> to vector<16x128xf32>
    %207 = arith.subf %1, %206 : vector<16x128xf32>
    %208 = vector.extract_strided_slice %3 {offsets = [16, 0], sizes = [1, 128], strides = [1, 1]} : vector<54x128xf32> to vector<1x128xf32>
    %209 = vector.broadcast %208 : vector<1x128xf32> to vector<16x128xf32>
    %210 = arith.mulf %207, %209 : vector<16x128xf32>
    %211 = arith.mulf %210, %91 : vector<16x128xf32>
    %212 = vector.broadcast %14 : vector<1x128xf32> to vector<16x128xf32>
    %213 = arith.subf %212, %1 : vector<16x128xf32>
    %214 = vector.extract_strided_slice %3 {offsets = [17, 0], sizes = [1, 128], strides = [1, 1]} : vector<54x128xf32> to vector<1x128xf32>
    %215 = vector.broadcast %214 : vector<1x128xf32> to vector<16x128xf32>
    %216 = arith.mulf %213, %215 : vector<16x128xf32>
    %217 = arith.mulf %216, %96 : vector<16x128xf32>
    %218 = arith.addf %211, %217 : vector<16x128xf32>
    %219 = vector.broadcast %13 : vector<1x128xf32> to vector<16x128xf32>
    %220 = arith.subf %1, %219 : vector<16x128xf32>
    %221 = vector.extract_strided_slice %3 {offsets = [18, 0], sizes = [1, 128], strides = [1, 1]} : vector<54x128xf32> to vector<1x128xf32>
    %222 = vector.broadcast %221 : vector<1x128xf32> to vector<16x128xf32>
    %223 = arith.mulf %220, %222 : vector<16x128xf32>
    %224 = arith.mulf %223, %96 : vector<16x128xf32>
    %225 = vector.broadcast %15 : vector<1x128xf32> to vector<16x128xf32>
    %226 = arith.subf %225, %1 : vector<16x128xf32>
    %227 = vector.extract_strided_slice %3 {offsets = [19, 0], sizes = [1, 128], strides = [1, 1]} : vector<54x128xf32> to vector<1x128xf32>
    %228 = vector.broadcast %227 : vector<1x128xf32> to vector<16x128xf32>
    %229 = arith.mulf %226, %228 : vector<16x128xf32>
    %230 = arith.mulf %229, %101 : vector<16x128xf32>
    %231 = arith.addf %224, %230 : vector<16x128xf32>
    %232 = vector.broadcast %4 : vector<1x128xf32> to vector<16x128xf32>
    %233 = arith.subf %1, %232 : vector<16x128xf32>
    %234 = vector.extract_strided_slice %3 {offsets = [20, 0], sizes = [1, 128], strides = [1, 1]} : vector<54x128xf32> to vector<1x128xf32>
    %235 = vector.broadcast %234 : vector<1x128xf32> to vector<16x128xf32>
    %236 = arith.mulf %233, %235 : vector<16x128xf32>
    %237 = arith.mulf %236, %114 : vector<16x128xf32>
    %238 = vector.broadcast %7 : vector<1x128xf32> to vector<16x128xf32>
    %239 = arith.subf %238, %1 : vector<16x128xf32>
    %240 = vector.extract_strided_slice %3 {offsets = [21, 0], sizes = [1, 128], strides = [1, 1]} : vector<54x128xf32> to vector<1x128xf32>
    %241 = vector.broadcast %240 : vector<1x128xf32> to vector<16x128xf32>
    %242 = arith.mulf %239, %241 : vector<16x128xf32>
    %243 = arith.mulf %242, %127 : vector<16x128xf32>
    %244 = arith.addf %237, %243 : vector<16x128xf32>
    %245 = vector.broadcast %5 : vector<1x128xf32> to vector<16x128xf32>
    %246 = arith.subf %1, %245 : vector<16x128xf32>
    %247 = vector.extract_strided_slice %3 {offsets = [22, 0], sizes = [1, 128], strides = [1, 1]} : vector<54x128xf32> to vector<1x128xf32>
    %248 = vector.broadcast %247 : vector<1x128xf32> to vector<16x128xf32>
    %249 = arith.mulf %246, %248 : vector<16x128xf32>
    %250 = arith.mulf %249, %127 : vector<16x128xf32>
    %251 = vector.broadcast %8 : vector<1x128xf32> to vector<16x128xf32>
    %252 = arith.subf %251, %1 : vector<16x128xf32>
    %253 = vector.extract_strided_slice %3 {offsets = [23, 0], sizes = [1, 128], strides = [1, 1]} : vector<54x128xf32> to vector<1x128xf32>
    %254 = vector.broadcast %253 : vector<1x128xf32> to vector<16x128xf32>
    %255 = arith.mulf %252, %254 : vector<16x128xf32>
    %256 = arith.mulf %255, %140 : vector<16x128xf32>
    %257 = arith.addf %250, %256 : vector<16x128xf32>
    %258 = vector.broadcast %6 : vector<1x128xf32> to vector<16x128xf32>
    %259 = arith.subf %1, %258 : vector<16x128xf32>
    %260 = vector.extract_strided_slice %3 {offsets = [24, 0], sizes = [1, 128], strides = [1, 1]} : vector<54x128xf32> to vector<1x128xf32>
    %261 = vector.broadcast %260 : vector<1x128xf32> to vector<16x128xf32>
    %262 = arith.mulf %259, %261 : vector<16x128xf32>
    %263 = arith.mulf %262, %140 : vector<16x128xf32>
    %264 = vector.broadcast %9 : vector<1x128xf32> to vector<16x128xf32>
    %265 = arith.subf %264, %1 : vector<16x128xf32>
    %266 = vector.extract_strided_slice %3 {offsets = [25, 0], sizes = [1, 128], strides = [1, 1]} : vector<54x128xf32> to vector<1x128xf32>
    %267 = vector.broadcast %266 : vector<1x128xf32> to vector<16x128xf32>
    %268 = arith.mulf %265, %267 : vector<16x128xf32>
    %269 = arith.mulf %268, %153 : vector<16x128xf32>
    %270 = arith.addf %263, %269 : vector<16x128xf32>
    %271 = vector.broadcast %7 : vector<1x128xf32> to vector<16x128xf32>
    %272 = arith.subf %1, %271 : vector<16x128xf32>
    %273 = vector.extract_strided_slice %3 {offsets = [26, 0], sizes = [1, 128], strides = [1, 1]} : vector<54x128xf32> to vector<1x128xf32>
    %274 = vector.broadcast %273 : vector<1x128xf32> to vector<16x128xf32>
    %275 = arith.mulf %272, %274 : vector<16x128xf32>
    %276 = arith.mulf %275, %153 : vector<16x128xf32>
    %277 = vector.broadcast %10 : vector<1x128xf32> to vector<16x128xf32>
    %278 = arith.subf %277, %1 : vector<16x128xf32>
    %279 = vector.extract_strided_slice %3 {offsets = [27, 0], sizes = [1, 128], strides = [1, 1]} : vector<54x128xf32> to vector<1x128xf32>
    %280 = vector.broadcast %279 : vector<1x128xf32> to vector<16x128xf32>
    %281 = arith.mulf %278, %280 : vector<16x128xf32>
    %282 = arith.mulf %281, %166 : vector<16x128xf32>
    %283 = arith.addf %276, %282 : vector<16x128xf32>
    %284 = vector.broadcast %8 : vector<1x128xf32> to vector<16x128xf32>
    %285 = arith.subf %1, %284 : vector<16x128xf32>
    %286 = vector.extract_strided_slice %3 {offsets = [28, 0], sizes = [1, 128], strides = [1, 1]} : vector<54x128xf32> to vector<1x128xf32>
    %287 = vector.broadcast %286 : vector<1x128xf32> to vector<16x128xf32>
    %288 = arith.mulf %285, %287 : vector<16x128xf32>
    %289 = arith.mulf %288, %166 : vector<16x128xf32>
    %290 = vector.broadcast %11 : vector<1x128xf32> to vector<16x128xf32>
    %291 = arith.subf %290, %1 : vector<16x128xf32>
    %292 = vector.extract_strided_slice %3 {offsets = [29, 0], sizes = [1, 128], strides = [1, 1]} : vector<54x128xf32> to vector<1x128xf32>
    %293 = vector.broadcast %292 : vector<1x128xf32> to vector<16x128xf32>
    %294 = arith.mulf %291, %293 : vector<16x128xf32>
    %295 = arith.mulf %294, %179 : vector<16x128xf32>
    %296 = arith.addf %289, %295 : vector<16x128xf32>
    %297 = vector.broadcast %9 : vector<1x128xf32> to vector<16x128xf32>
    %298 = arith.subf %1, %297 : vector<16x128xf32>
    %299 = vector.extract_strided_slice %3 {offsets = [30, 0], sizes = [1, 128], strides = [1, 1]} : vector<54x128xf32> to vector<1x128xf32>
    %300 = vector.broadcast %299 : vector<1x128xf32> to vector<16x128xf32>
    %301 = arith.mulf %298, %300 : vector<16x128xf32>
    %302 = arith.mulf %301, %179 : vector<16x128xf32>
    %303 = vector.broadcast %12 : vector<1x128xf32> to vector<16x128xf32>
    %304 = arith.subf %303, %1 : vector<16x128xf32>
    %305 = vector.extract_strided_slice %3 {offsets = [31, 0], sizes = [1, 128], strides = [1, 1]} : vector<54x128xf32> to vector<1x128xf32>
    %306 = vector.broadcast %305 : vector<1x128xf32> to vector<16x128xf32>
    %307 = arith.mulf %304, %306 : vector<16x128xf32>
    %308 = arith.mulf %307, %192 : vector<16x128xf32>
    %309 = arith.addf %302, %308 : vector<16x128xf32>
    %310 = vector.broadcast %10 : vector<1x128xf32> to vector<16x128xf32>
    %311 = arith.subf %1, %310 : vector<16x128xf32>
    %312 = vector.extract_strided_slice %3 {offsets = [32, 0], sizes = [1, 128], strides = [1, 1]} : vector<54x128xf32> to vector<1x128xf32>
    %313 = vector.broadcast %312 : vector<1x128xf32> to vector<16x128xf32>
    %314 = arith.mulf %311, %313 : vector<16x128xf32>
    %315 = arith.mulf %314, %192 : vector<16x128xf32>
    %316 = vector.broadcast %13 : vector<1x128xf32> to vector<16x128xf32>
    %317 = arith.subf %316, %1 : vector<16x128xf32>
    %318 = vector.extract_strided_slice %3 {offsets = [33, 0], sizes = [1, 128], strides = [1, 1]} : vector<54x128xf32> to vector<1x128xf32>
    %319 = vector.broadcast %318 : vector<1x128xf32> to vector<16x128xf32>
    %320 = arith.mulf %317, %319 : vector<16x128xf32>
    %321 = arith.mulf %320, %205 : vector<16x128xf32>
    %322 = arith.addf %315, %321 : vector<16x128xf32>
    %323 = vector.broadcast %11 : vector<1x128xf32> to vector<16x128xf32>
    %324 = arith.subf %1, %323 : vector<16x128xf32>
    %325 = vector.extract_strided_slice %3 {offsets = [34, 0], sizes = [1, 128], strides = [1, 1]} : vector<54x128xf32> to vector<1x128xf32>
    %326 = vector.broadcast %325 : vector<1x128xf32> to vector<16x128xf32>
    %327 = arith.mulf %324, %326 : vector<16x128xf32>
    %328 = arith.mulf %327, %205 : vector<16x128xf32>
    %329 = vector.broadcast %14 : vector<1x128xf32> to vector<16x128xf32>
    %330 = arith.subf %329, %1 : vector<16x128xf32>
    %331 = vector.extract_strided_slice %3 {offsets = [35, 0], sizes = [1, 128], strides = [1, 1]} : vector<54x128xf32> to vector<1x128xf32>
    %332 = vector.broadcast %331 : vector<1x128xf32> to vector<16x128xf32>
    %333 = arith.mulf %330, %332 : vector<16x128xf32>
    %334 = arith.mulf %333, %218 : vector<16x128xf32>
    %335 = arith.addf %328, %334 : vector<16x128xf32>
    %336 = vector.broadcast %12 : vector<1x128xf32> to vector<16x128xf32>
    %337 = arith.subf %1, %336 : vector<16x128xf32>
    %338 = vector.extract_strided_slice %3 {offsets = [36, 0], sizes = [1, 128], strides = [1, 1]} : vector<54x128xf32> to vector<1x128xf32>
    %339 = vector.broadcast %338 : vector<1x128xf32> to vector<16x128xf32>
    %340 = arith.mulf %337, %339 : vector<16x128xf32>
    %341 = arith.mulf %340, %218 : vector<16x128xf32>
    %342 = vector.broadcast %15 : vector<1x128xf32> to vector<16x128xf32>
    %343 = arith.subf %342, %1 : vector<16x128xf32>
    %344 = vector.extract_strided_slice %3 {offsets = [37, 0], sizes = [1, 128], strides = [1, 1]} : vector<54x128xf32> to vector<1x128xf32>
    %345 = vector.broadcast %344 : vector<1x128xf32> to vector<16x128xf32>
    %346 = arith.mulf %343, %345 : vector<16x128xf32>
    %347 = arith.mulf %346, %231 : vector<16x128xf32>
    %348 = arith.addf %341, %347 : vector<16x128xf32>
    %349 = vector.broadcast %4 : vector<1x128xf32> to vector<16x128xf32>
    %350 = arith.subf %1, %349 : vector<16x128xf32>
    %351 = vector.extract_strided_slice %3 {offsets = [38, 0], sizes = [1, 128], strides = [1, 1]} : vector<54x128xf32> to vector<1x128xf32>
    %352 = vector.broadcast %351 : vector<1x128xf32> to vector<16x128xf32>
    %353 = arith.mulf %350, %352 : vector<16x128xf32>
    %354 = arith.mulf %353, %244 : vector<16x128xf32>
    %355 = vector.broadcast %8 : vector<1x128xf32> to vector<16x128xf32>
    %356 = arith.subf %355, %1 : vector<16x128xf32>
    %357 = vector.extract_strided_slice %3 {offsets = [39, 0], sizes = [1, 128], strides = [1, 1]} : vector<54x128xf32> to vector<1x128xf32>
    %358 = vector.broadcast %357 : vector<1x128xf32> to vector<16x128xf32>
    %359 = arith.mulf %356, %358 : vector<16x128xf32>
    %360 = arith.mulf %359, %257 : vector<16x128xf32>
    %361 = arith.addf %354, %360 : vector<16x128xf32>
    %362 = vector.broadcast %5 : vector<1x128xf32> to vector<16x128xf32>
    %363 = arith.subf %1, %362 : vector<16x128xf32>
    %364 = vector.extract_strided_slice %3 {offsets = [40, 0], sizes = [1, 128], strides = [1, 1]} : vector<54x128xf32> to vector<1x128xf32>
    %365 = vector.broadcast %364 : vector<1x128xf32> to vector<16x128xf32>
    %366 = arith.mulf %363, %365 : vector<16x128xf32>
    %367 = arith.mulf %366, %257 : vector<16x128xf32>
    %368 = vector.broadcast %9 : vector<1x128xf32> to vector<16x128xf32>
    %369 = arith.subf %368, %1 : vector<16x128xf32>
    %370 = vector.extract_strided_slice %3 {offsets = [41, 0], sizes = [1, 128], strides = [1, 1]} : vector<54x128xf32> to vector<1x128xf32>
    %371 = vector.broadcast %370 : vector<1x128xf32> to vector<16x128xf32>
    %372 = arith.mulf %369, %371 : vector<16x128xf32>
    %373 = arith.mulf %372, %270 : vector<16x128xf32>
    %374 = arith.addf %367, %373 : vector<16x128xf32>
    %375 = vector.broadcast %6 : vector<1x128xf32> to vector<16x128xf32>
    %376 = arith.subf %1, %375 : vector<16x128xf32>
    %377 = vector.extract_strided_slice %3 {offsets = [42, 0], sizes = [1, 128], strides = [1, 1]} : vector<54x128xf32> to vector<1x128xf32>
    %378 = vector.broadcast %377 : vector<1x128xf32> to vector<16x128xf32>
    %379 = arith.mulf %376, %378 : vector<16x128xf32>
    %380 = arith.mulf %379, %270 : vector<16x128xf32>
    %381 = vector.broadcast %10 : vector<1x128xf32> to vector<16x128xf32>
    %382 = arith.subf %381, %1 : vector<16x128xf32>
    %383 = vector.extract_strided_slice %3 {offsets = [43, 0], sizes = [1, 128], strides = [1, 1]} : vector<54x128xf32> to vector<1x128xf32>
    %384 = vector.broadcast %383 : vector<1x128xf32> to vector<16x128xf32>
    %385 = arith.mulf %382, %384 : vector<16x128xf32>
    %386 = arith.mulf %385, %283 : vector<16x128xf32>
    %387 = arith.addf %380, %386 : vector<16x128xf32>
    %388 = vector.broadcast %7 : vector<1x128xf32> to vector<16x128xf32>
    %389 = arith.subf %1, %388 : vector<16x128xf32>
    %390 = vector.extract_strided_slice %3 {offsets = [44, 0], sizes = [1, 128], strides = [1, 1]} : vector<54x128xf32> to vector<1x128xf32>
    %391 = vector.broadcast %390 : vector<1x128xf32> to vector<16x128xf32>
    %392 = arith.mulf %389, %391 : vector<16x128xf32>
    %393 = arith.mulf %392, %283 : vector<16x128xf32>
    %394 = vector.broadcast %11 : vector<1x128xf32> to vector<16x128xf32>
    %395 = arith.subf %394, %1 : vector<16x128xf32>
    %396 = vector.extract_strided_slice %3 {offsets = [45, 0], sizes = [1, 128], strides = [1, 1]} : vector<54x128xf32> to vector<1x128xf32>
    %397 = vector.broadcast %396 : vector<1x128xf32> to vector<16x128xf32>
    %398 = arith.mulf %395, %397 : vector<16x128xf32>
    %399 = arith.mulf %398, %296 : vector<16x128xf32>
    %400 = arith.addf %393, %399 : vector<16x128xf32>
    %401 = vector.broadcast %8 : vector<1x128xf32> to vector<16x128xf32>
    %402 = arith.subf %1, %401 : vector<16x128xf32>
    %403 = vector.extract_strided_slice %3 {offsets = [46, 0], sizes = [1, 128], strides = [1, 1]} : vector<54x128xf32> to vector<1x128xf32>
    %404 = vector.broadcast %403 : vector<1x128xf32> to vector<16x128xf32>
    %405 = arith.mulf %402, %404 : vector<16x128xf32>
    %406 = arith.mulf %405, %296 : vector<16x128xf32>
    %407 = vector.broadcast %12 : vector<1x128xf32> to vector<16x128xf32>
    %408 = arith.subf %407, %1 : vector<16x128xf32>
    %409 = vector.extract_strided_slice %3 {offsets = [47, 0], sizes = [1, 128], strides = [1, 1]} : vector<54x128xf32> to vector<1x128xf32>
    %410 = vector.broadcast %409 : vector<1x128xf32> to vector<16x128xf32>
    %411 = arith.mulf %408, %410 : vector<16x128xf32>
    %412 = arith.mulf %411, %309 : vector<16x128xf32>
    %413 = arith.addf %406, %412 : vector<16x128xf32>
    %414 = vector.broadcast %9 : vector<1x128xf32> to vector<16x128xf32>
    %415 = arith.subf %1, %414 : vector<16x128xf32>
    %416 = vector.extract_strided_slice %3 {offsets = [48, 0], sizes = [1, 128], strides = [1, 1]} : vector<54x128xf32> to vector<1x128xf32>
    %417 = vector.broadcast %416 : vector<1x128xf32> to vector<16x128xf32>
    %418 = arith.mulf %415, %417 : vector<16x128xf32>
    %419 = arith.mulf %418, %309 : vector<16x128xf32>
    %420 = vector.broadcast %13 : vector<1x128xf32> to vector<16x128xf32>
    %421 = arith.subf %420, %1 : vector<16x128xf32>
    %422 = vector.extract_strided_slice %3 {offsets = [49, 0], sizes = [1, 128], strides = [1, 1]} : vector<54x128xf32> to vector<1x128xf32>
    %423 = vector.broadcast %422 : vector<1x128xf32> to vector<16x128xf32>
    %424 = arith.mulf %421, %423 : vector<16x128xf32>
    %425 = arith.mulf %424, %322 : vector<16x128xf32>
    %426 = arith.addf %419, %425 : vector<16x128xf32>
    %427 = vector.broadcast %10 : vector<1x128xf32> to vector<16x128xf32>
    %428 = arith.subf %1, %427 : vector<16x128xf32>
    %429 = vector.extract_strided_slice %3 {offsets = [50, 0], sizes = [1, 128], strides = [1, 1]} : vector<54x128xf32> to vector<1x128xf32>
    %430 = vector.broadcast %429 : vector<1x128xf32> to vector<16x128xf32>
    %431 = arith.mulf %428, %430 : vector<16x128xf32>
    %432 = arith.mulf %431, %322 : vector<16x128xf32>
    %433 = vector.broadcast %14 : vector<1x128xf32> to vector<16x128xf32>
    %434 = arith.subf %433, %1 : vector<16x128xf32>
    %435 = vector.extract_strided_slice %3 {offsets = [51, 0], sizes = [1, 128], strides = [1, 1]} : vector<54x128xf32> to vector<1x128xf32>
    %436 = vector.broadcast %435 : vector<1x128xf32> to vector<16x128xf32>
    %437 = arith.mulf %434, %436 : vector<16x128xf32>
    %438 = arith.mulf %437, %335 : vector<16x128xf32>
    %439 = arith.addf %432, %438 : vector<16x128xf32>
    %440 = vector.broadcast %11 : vector<1x128xf32> to vector<16x128xf32>
    %441 = arith.subf %1, %440 : vector<16x128xf32>
    %442 = vector.extract_strided_slice %3 {offsets = [52, 0], sizes = [1, 128], strides = [1, 1]} : vector<54x128xf32> to vector<1x128xf32>
    %443 = vector.broadcast %442 : vector<1x128xf32> to vector<16x128xf32>
    %444 = arith.mulf %441, %443 : vector<16x128xf32>
    %445 = arith.mulf %444, %335 : vector<16x128xf32>
    %446 = vector.broadcast %15 : vector<1x128xf32> to vector<16x128xf32>
    %447 = arith.subf %446, %1 : vector<16x128xf32>
    %448 = vector.extract_strided_slice %3 {offsets = [53, 0], sizes = [1, 128], strides = [1, 1]} : vector<54x128xf32> to vector<1x128xf32>
    %449 = vector.broadcast %448 : vector<1x128xf32> to vector<16x128xf32>
    %450 = arith.mulf %447, %449 : vector<16x128xf32>
    %451 = arith.mulf %450, %348 : vector<16x128xf32>
    %452 = arith.addf %445, %451 : vector<16x128xf32>
    %453 = arith.truncf %22 : vector<16x128xf32> to vector<16x128xbf16>
    %454 = arith.truncf %361 : vector<16x128xf32> to vector<16x128xbf16>
    %455 = arith.truncf %374 : vector<16x128xf32> to vector<16x128xbf16>
    %456 = arith.truncf %387 : vector<16x128xf32> to vector<16x128xbf16>
    %457 = arith.truncf %400 : vector<16x128xf32> to vector<16x128xbf16>
    %458 = arith.truncf %413 : vector<16x128xf32> to vector<16x128xbf16>
    %459 = arith.truncf %426 : vector<16x128xf32> to vector<16x128xbf16>
    %460 = arith.truncf %439 : vector<16x128xf32> to vector<16x128xbf16>
    %461 = arith.truncf %452 : vector<16x128xf32> to vector<16x128xbf16>
    %462 = tpu.concatenate %453, %454, %455, %456, %457, %458, %459, %460, %461 in 1 : vector<16x128xbf16>, vector<16x128xbf16>, vector<16x128xbf16>, vector<16x128xbf16>, vector<16x128xbf16>, vector<16x128xbf16>, vector<16x128xbf16>, vector<16x128xbf16>, vector<16x128xbf16> -> vector<16x1152xbf16>
    %c0_40 = arith.constant 0 : index
    %c0_41 = arith.constant 0 : index
    %c0_42 = arith.constant 0 : index
    %463 = vector.load %arg4[%c0_40, %c0_41, %c0_42] : memref<1x1152x128xbf16, #tpu.memory_space<vmem>>, vector<1x1152x128xbf16>
    %464 = vector.shape_cast %463 : vector<1x1152x128xbf16> to vector<1152x128xbf16>
    %cst_43 = arith.constant dense<0.000000e+00> : vector<16x128xf32>
    %465 = tpu.matmul %462, %464, %cst_43 {dimension_numbers = #tpu.dot_dimension_numbers<[1], [0], [0], [1], [0, 0, 1, 1], [], []>} : vector<16x1152xbf16>, vector<1152x128xbf16>, vector<16x128xf32> -> vector<16x128xf32>
    %466 = arith.addf %0, %465 : vector<16x128xf32>
    %c0_44 = arith.constant 0 : index
    %c0_45 = arith.constant 0 : index
    %467 = vector.load %arg5[%c0_44, %c0_45] : memref<16x128xf32, #tpu.memory_space<vmem>>, vector<16x128xf32>
    tpu.vector_store %arg5[%c0_44, %c0_45], %466 {strides = array<i32>} : memref<16x128xf32, #tpu.memory_space<vmem>>, vector<16x128xf32>,
    return
  }
  func.func @transform_0(%arg0: i32) -> (i32, i32) {
    %c0_i32 = arith.constant 0 : i32
    %c0_i32_0 = arith.constant 0 : i32
    return %arg0, %c0_i32 : i32, i32
  }
  func.func @transform_1(%arg0: i32) -> (i32, i32) {
    %c0_i32 = arith.constant 0 : i32
    %c0_i32_0 = arith.constant 0 : i32
    %c0_i32_1 = arith.constant 0 : i32
    return %c0_i32, %c0_i32_0 : i32, i32
  }
  func.func @transform_2(%arg0: i32) -> (i32, i32) {
    %c0_i32 = arith.constant 0 : i32
    %c0_i32_0 = arith.constant 0 : i32
    %c0_i32_1 = arith.constant 0 : i32
    return %c0_i32, %c0_i32_0 : i32, i32
  }
  func.func @transform_3(%arg0: i32) -> (i32, i32, i32) {
    %c0_i32 = arith.constant 0 : i32
    %c0_i32_0 = arith.constant 0 : i32
    %c0_i32_1 = arith.constant 0 : i32
    %c0_i32_2 = arith.constant 0 : i32
    return %c0_i32, %c0_i32_0, %c0_i32_1 : i32, i32, i32
  }
  func.func @transform_4(%arg0: i32) -> (i32, i32) {
    %c0_i32 = arith.constant 0 : i32
    %c0_i32_0 = arith.constant 0 : i32
    return %arg0, %c0_i32 : i32, i32
  }
}

</mosaic_0001>

<bundles_post_ra>
// kernel: kan_linear.1
= control target key start
LH: loop header
LB: loop body
LE: loop exit
PB: predicated region body
PF: predicated region fallthrough
CT: control target
= control target key end

     0   :  { %9 = vsyncpa [#allocation3], 0  ;;  %s2892_s0 = inlined_call_operand.hbm [shape: f32[16,128], index: 0, kind: input, shape index: {}]   ;;  %s2893_s1 = inlined_call_operand.hbm [shape: f32[12,128], index: 1, kind: input, shape index: {}]   ;;  %s2894_s2 = inlined_call_operand.hbm [shape: f32[54,128], index: 2, kind: input, shape index: {}]   ;;  %s2895_s3 = inlined_call_operand.hbm [shape: bf16[1,1152,128], index: 3, kind: input, shape index: {}]   ;;  %s2896_s4 = inlined_call_operand.hbm [shape: f32[16,128], index: 4, kind: output, shape index: {}]  }
   0x1   :  { %10 = vsyncpa [#allocation6], 0 }
   0x2   :  { %11 = vsyncpa [#allocation9], 0 }
   0x3   :  { %12 = vsyncpa [#allocation4], 0  ;;  %s1974_s15 = smov [#allocation5]   ;;  %s1975_s17 = smov [#allocation2]  }
   0x4   :  { %s30_s16 = sshll.u32 %s1974_s15, 4  ;;  %s18_s18 = sshll.u32 %s1975_s17, 4  ;;  %s31_s16 = int_to_ptr.vmem [resolvable:$true] %s30_s16  ;;  %s2011_s18 = int_to_ptr.vmem [resolvable:$true] %s18_s18 }
   0x5   :  { %s1856_s21 = scalar_lea.hbm %s2893_s1, 256 }
   0x6   :  { %p1857_p0 = scmp.ne.s32.totalorder %s2893_s1, %s1856_s21  ;;  %p1860_p1 = scmp.lt.u32.totalorder %s1856_s21, %s2893_s1 }
   0x8   :  { %p1862_p2 = pnand %p1860_p1, %p1857_p0 }
   0xa   :  { %1865 = shalt.err (!%p1862_p2)
}
   0xb   :  { %s1866_s26 = scalar_lea.vmem %s31_s16, 256  ;;  %p1871_p4 = scmp.lt.s32.totalorder %s31_s16, %s31_s16 }
   0xc   :  { %p1867_p3 = scmp.ne.s32.totalorder %s31_s16, %s1866_s26  ;;  %p1872_p5 = scmp.lt.s32.totalorder %s1866_s26, %s1866_s26 }
   0xe   :  { %p1873_p6 = por %p1872_p5, %p1871_p4 }
  0x10   :  { %p1874_p7 = pnand %p1873_p6, %p1867_p3 }
  0x12   :  { %1877 = shalt.err (!%p1874_p7)
}
  0x13   :  { %s1976_s27 = smov 128   ;;  %s1977_s28 = smov 8  }
  0x14   :  { %36 = dma.hbm_to_vmem [thread:$0]  %s2893_s1, 256, %s31_s16, [#allocation6], %s1976_s27, %s1976_s27, %s1977_s28  }
  0x15   :  { %s1878_s7 = scalar_lea.hbm %s2892_s0, 256 }
  0x16   :  { %p1879_p8 = scmp.ne.s32.totalorder %s2892_s0, %s1878_s7  ;;  %p1882_p9 = scmp.lt.u32.totalorder %s1878_s7, %s2892_s0 }
  0x18   :  { %p1884_p10 = pnand %p1882_p9, %p1879_p8 }
  0x1a   :  { %1887 = shalt.err (!%p1884_p10)
}
  0x1b   :  { %s1888_s12 = scalar_lea.vmem %s2011_s18, 256  ;;  %p1893_p12 = scmp.lt.s32.totalorder %s2011_s18, %s2011_s18 }
  0x1c   :  { %p1889_p11 = scmp.ne.s32.totalorder %s2011_s18, %s1888_s12  ;;  %p1894_p13 = scmp.lt.s32.totalorder %s1888_s12, %s1888_s12 }
  0x1e   :  { %p1895_p0 = por %p1894_p13, %p1893_p12 }
  0x20   :  { %p1896_p1 = pnand %p1895_p0, %p1889_p11 }
  0x22   :  { %1899 = shalt.err (!%p1896_p1)
}
  0x23   :  { %24 = dma.hbm_to_vmem [thread:$0]  %s2892_s0, 256, %s2011_s18, [#allocation3], %s1976_s27, %s1976_s27, %s1977_s28  }
  0x24   :  { %s1978_s14 = smov [#allocation7]   ;;  %s1979_s16 = smov [#allocation8]  }
  0x25   :  { %s42_s15 = sshll.u32 %s1978_s14, 4  ;;  %s54_s17 = sshll.u32 %s1979_s16, 4  ;;  %s43_s15 = int_to_ptr.vmem [resolvable:$true] %s42_s15  ;;  %s2048_s17 = int_to_ptr.vmem [resolvable:$true] %s54_s17 }
  0x26   :  { %s1900_s21 = scalar_lea.hbm %s2894_s2, 896 }
  0x27   :  { %p1901_p2 = scmp.ne.s32.totalorder %s2894_s2, %s1900_s21  ;;  %p1904_p3 = scmp.lt.u32.totalorder %s1900_s21, %s2894_s2 }
  0x29   :  { %p1906_p4 = pnand %p1904_p3, %p1901_p2 }
  0x2b   :  { %1909 = shalt.err (!%p1906_p4)
}
  0x2c   :  { %s1910_s0 = scalar_lea.vmem %s43_s15, 896  ;;  %p1915_p6 = scmp.lt.s32.totalorder %s43_s15, %s43_s15 }
  0x2d   :  { %p1911_p5 = scmp.ne.s32.totalorder %s43_s15, %s1910_s0  ;;  %p1916_p7 = scmp.lt.s32.totalorder %s1910_s0, %s1910_s0 }
  0x2f   :  { %p1917_p8 = por %p1916_p7, %p1915_p6 }
  0x31   :  { %p1918_p9 = pnand %p1917_p8, %p1911_p5 }
  0x33   :  { %1921 = shalt.err (!%p1918_p9)
}
  0x34   :  { %48 = dma.hbm_to_vmem [thread:$0]  %s2894_s2, 896, %s43_s15, [#allocation6], %s1976_s27, %s1976_s27, %s1977_s28  }
  0x35   :  { %s1922_s5 = scalar_lea.hbm %s2895_s3, 9216 }
  0x36   :  { %p1923_p10 = scmp.ne.s32.totalorder %s2895_s3, %s1922_s5  ;;  %p1926_p11 = scmp.lt.u32.totalorder %s1922_s5, %s2895_s3 }
  0x38   :  { %p1928_p12 = pnand %p1926_p11, %p1923_p10 }
  0x3a   :  { %1931 = shalt.err (!%p1928_p12)
}
  0x3b   :  { %s1932_s10 = scalar_lea.vmem %s2048_s17, 9216  ;;  %p1937_p0 = scmp.lt.s32.totalorder %s2048_s17, %s2048_s17 }
  0x3c   :  { %p1933_p13 = scmp.ne.s32.totalorder %s2048_s17, %s1932_s10  ;;  %p1938_p1 = scmp.lt.s32.totalorder %s1932_s10, %s1932_s10 }
  0x3e   :  { %p1939_p2 = por %p1938_p1, %p1937_p0 }
  0x40   :  { %p1940_p3 = pnand %p1939_p2, %p1933_p13 }
  0x42   :  { %1943 = shalt.err (!%p1940_p3)
}
  0x43   :  { %s1980_s2 = smov 64   ;;  %s1981_s11 = smov 4  }
  0x44   :  { %60 = dma.hbm_to_vmem [thread:$0]  %s2895_s3, 9216, %s2048_s17, [#allocation9], %s1980_s2, %s1980_s2, %s1981_s11  }
  0x45   :  { %1966 = dma.done.wait [#allocation3], 256  }
  0x46   :  { %1967 = vsyncadd [#allocation3], 4294967040 }
  0x47   :  { %1968 = dma.done.wait [#allocation6], 1152  }
  0x48   :  { %1969 = vsyncadd [#allocation6], 4294966144 }
  0x49   :  { %1970 = dma.done.wait [#allocation9], 9216  }
  0x4a   :  { %1971 = vsyncadd [#allocation9], 4294958080  ;;  %v1773_v0 = vld [vmem:[#allocation8 + $0x40] sm:$0xff]   ;;  %v1777_v4 = vld [vmem:[#allocation8 + $0x48] sm:$0xff]   ;;  %v97_v19 = vlaneseq  ;;  %vm1982_vm7 = vmmov 1   ;;  %v1983_v62 = vmov 0.0  }
  0x4b   :  { %v1774_v1 = vld [vmem:[#allocation8 + $0xc0] sm:$0xff]   ;;  %1644 = vmatprep.subr.bf16.mxu0 %v1773_v0  ;;  %v1778_v5 = vld [vmem:[#allocation8 + $0xc8] sm:$0xff]   ;;  %v1781_v8 = vld [vmem:[#allocation8 + $0x50] sm:$0xff]   ;;  %s1985_s3 = smov [#allocation10]  }
  0x4c   :  { %v1775_v2 = vld [vmem:[#allocation8] sm:$0xff]   ;;  %1666 = vmatprep.subr.bf16.mxu1 %v1774_v1  ;;  %v1779_v6 = vld [vmem:[#allocation8 + $0x8] sm:$0xff]   ;;  %v1782_v9 = vld [vmem:[#allocation8 + $0xd0] sm:$0xff]   ;;  %v98_v24 = vshrl.u32 %v97_v19, 7  ;;  %s1558_s13 = sshll.u32 %s1985_s3, 4  ;;  %s1559_s13 = int_to_ptr.vmem [resolvable:$true] %s1558_s13 }
  0x4d   :  { %v1776_v3 = vld [vmem:[#allocation8 + $0x80] sm:$0xff]   ;;  %1645 = vmatpush3.bf16.msra.mxu0 %v1775_v2  ;;  %v1780_v7 = vld [vmem:[#allocation8 + $0x88] sm:$0xff]   ;;  %v1783_v10 = vld [vmem:[#allocation8 + $0x10] sm:$0xff]   ;;  %s1944_s14 = scalar_lea.vmem %s1559_s13, 256  ;;  %p1949_p5 = scmp.lt.s32.totalorder %s1559_s13, %s1559_s13 }
  0x4e   :  { %1667 = vmatpush3.bf16.msra.mxu1 %v1776_v3  ;;  %1646 = vmatprep.subr.bf16.mxu0 %v1777_v4  ;;  %v1784_v11 = vld [vmem:[#allocation8 + $0x90] sm:$0xff]   ;;  %v1785_v12 = vld [vmem:[#allocation8 + $0x58] sm:$0xff]   ;;  %v1789_v16 = vld [vmem:[#allocation8 + $0x60] sm:$0xff]   ;;  %v2082_v29 = vsub.s32 0, %v98_v24  ;;  %v2084_v31 = vsub.s32 1, %v98_v24  ;;  %v2086_v33 = vsub.s32 2, %v98_v24  ;;  %p1945_p4 = scmp.ne.s32.totalorder %s1559_s13, %s1944_s14  ;;  %p1950_p6 = scmp.lt.s32.totalorder %s1944_s14, %s1944_s14 }
  0x4f   :  { %1668 = vmatprep.subr.bf16.mxu1 %v1778_v5  ;;  %v1786_v13 = vld [vmem:[#allocation8 + $0xd8] sm:$0xff]   ;;  %v1790_v17 = vld [vmem:[#allocation8 + $0xe0] sm:$0xff]   ;;  %v1793_v21 = vld [vmem:[#allocation8 + $0x68] sm:$0xff]   ;;  %v2088_v35 = vsub.s32 3, %v98_v24  ;;  %v2090_v37 = vsub.s32 4, %v98_v24  ;;  %v2094_v40 = vsub.s32 5, %v98_v24 }
  0x50   :  { %v1787_v14 = vld [vmem:[#allocation8 + $0x18] sm:$0xff]   ;;  %v1791_v18 = vld [vmem:[#allocation8 + $0x20] sm:$0xff]   ;;  %v1794_v22 = vld [vmem:[#allocation8 + $0xe8] sm:$0xff]   ;;  %v2096_v41 = vsub.s32 6, %v98_v24  ;;  %v2120_v50 = vsub.s32 7, %v98_v24  ;;  %p1951_p7 = por %p1950_p6, %p1949_p5 }
  0x51   :  { %1647 = vmatpush3.bf16.msra.mxu0 %v1779_v6  ;;  %v1788_v15 = vld [vmem:[#allocation8 + $0x98] sm:$0xff]   ;;  %v1792_v20 = vld [vmem:[#allocation8 + $0xa0] sm:$0xff]   ;;  %v1795_v23 = vld [vmem:[#allocation8 + $0x28] sm:$0xff]  }
  0x52   :  { %1669 = vmatpush3.bf16.msra.mxu1 %v1780_v7  ;;  %1648 = vmatprep.subr.bf16.mxu0 %v1781_v8  ;;  %v1796_v25 = vld [vmem:[#allocation8 + $0xa8] sm:$0xff]   ;;  %v1797_v26 = vld [vmem:[#allocation8 + $0x70] sm:$0xff]   ;;  %v1801_v32 = vld [vmem:[#allocation8 + $0x78] sm:$0xff]   ;;  %p1952_p8 = pnand %p1951_p7, %p1945_p4 }
  0x53   :  { %1670 = vmatprep.subr.bf16.mxu1 %v1782_v9  ;;  %v1798_v27 = vld [vmem:[#allocation8 + $0xf0] sm:$0xff]   ;;  %v1802_v34 = vld [vmem:[#allocation8 + $0xf8] sm:$0xff]   ;;  %v2098_v42 = vld [vmem:[#allocation7] sm:$0xff] }
  0x54   :  { %v1799_v28 = vld [vmem:[#allocation8 + $0x30] sm:$0xff]   ;;  %v1803_v36 = vld [vmem:[#allocation8 + $0x38] sm:$0xff]   ;;  %v2112_v47 = vld [vmem:[#allocation2] sm:$0xff]  ;;  %v240_v51 = vrot.slane %v2098_v42, %v2082_v29  ;;  %v250_v52 = vrot.slane %v2098_v42, %v2084_v31  ;;  %v262_v53 = vrot.slane %v2098_v42, %v2086_v33 }
  0x55   :  { %1649 = vmatpush3.bf16.msra.mxu0 %v1783_v10  ;;  %v1800_v30 = vld [vmem:[#allocation8 + $0xb0] sm:$0xff]   ;;  %v1804_v38 = vld [vmem:[#allocation8 + $0xb8] sm:$0xff]   ;;  %v1805_v54 = vld [vmem:[#allocation8 + $0x140] sm:$0xff]  }
  0x56   :  { %1671 = vmatpush3.bf16.msra.mxu1 %v1784_v11  ;;  %1650 = vmatprep.subr.bf16.mxu0 %v1785_v12  ;;  %v2092_v39 = vld [vmem:[#allocation5] sm:$0xff]  ;;  %v2114_v48 = vld [vmem:[#allocation2 + $0x8] sm:$0xff]  ;;  %v1807_v61 = vld [vmem:[#allocation8 + $0x1c0] sm:$0xff]   ;;  %v272_v11 = vrot.slane %v2098_v42, %v2088_v35 }
  0x57   :  { %1672 = vmatprep.subr.bf16.mxu1 %v1786_v13  ;;  %v100_v43 = vrot.slane %v2092_v39, %v2082_v29  ;;  %v106_v44 = vrot.slane %v2092_v39, %v2084_v31  ;;  %v2106_v45 = vrot.slane %v2092_v39, %v2086_v33  ;;  %v2110_v46 = vrot.slane %v2092_v39, %v2088_v35  ;;  %v2215_v19 = vld [vmem:[#allocation7 + $0x10] sm:$0xff] }
  0x58   :  { %v2118_v49 = vrot.slane %v2092_v39, %v2090_v37 }
  0x59   :  { %1651 = vmatpush3.bf16.msra.mxu0 %v1787_v14  ;;  %vm101_vm0 = vcmp.ge.f32.partialorder %v2112_v47, %v100_v43  ;;  %vm107_vm1 = vcmp.ge.f32.partialorder %v2112_v47, %v106_v44  ;;  %vm108_vm2 = vcmp.ge.f32.partialorder %v2114_v48, %v106_v44  ;;  %vm102_vm3 = vcmp.ge.f32.partialorder %v2114_v48, %v100_v43 }
  0x5a   :  { %1673 = vmatpush3.bf16.msra.mxu1 %v1788_v15  ;;  %1652 = vmatprep.subr.bf16.mxu0 %v1789_v16  ;;  %vm113_vm4 = vcmp.ge.f32.partialorder %v2112_v47, %v2106_v45  ;;  %vm114_vm5 = vcmp.ge.f32.partialorder %v2114_v48, %v2106_v45  ;;  %vm119_vm6 = vcmp.ge.f32.partialorder %v2112_v47, %v2110_v46  ;;  %vm169_vm8 = vmxor %vm107_vm1, %vm1982_vm7 }
  0x5b   :  { %1674 = vmatprep.subr.bf16.mxu1 %v1790_v17  ;;  %vm120_vm9 = vcmp.ge.f32.partialorder %v2114_v48, %v2110_v46  ;;  %vm125_vm10 = vcmp.ge.f32.partialorder %v2112_v47, %v2118_v49  ;;  %vm170_vm11 = vmxor %vm108_vm2, %vm1982_vm7  ;;  %v2149_v55 = vsub.f32 %v2112_v47, %v100_v43  ;;  %v2152_v56 = vsub.f32 %v2114_v48, %v100_v43 }
  0x5c   :  { %vm126_vm12 = vcmp.ge.f32.partialorder %v2114_v48, %v2118_v49  ;;  %vm171_vm13 = vmand %vm101_vm0, %vm169_vm8  ;;  %v245_v57 = vsub.f32 %v2106_v45, %v2112_v47  ;;  %v246_v58 = vsub.f32 %v2106_v45, %v2114_v48  ;;  %v2163_v59 = vsub.f32 %v2112_v47, %v106_v44 }
  0x5d   :  { %1653 = vmatpush3.bf16.msra.mxu0 %v1791_v18  ;;  %v2166_v60 = vsub.f32 %v2114_v48, %v106_v44  ;;  %vm172_vm14 = vmand %vm102_vm3, %vm170_vm11  ;;  %v173_v63 = vsel %vm171_vm13, 1.0, %v1983_v62  ;;  %v241_v0 = vmul.f32 %v240_v51, %v2149_v55  ;;  %v242_v1 = vmul.f32 %v240_v51, %v2152_v56 }
  0x5e   :  { %1675 = vmatpush3.bf16.msra.mxu1 %v1792_v20  ;;  %1654 = vmatprep.subr.bf16.mxu0 %v1793_v21  ;;  %v267_v2 = vsub.f32 %v2110_v46, %v2112_v47  ;;  %v174_v3 = vsel %vm172_vm14, 1.0, %v1983_v62  ;;  %vm175_vm15 = vmxor %vm113_vm4, %vm1982_vm7  ;;  %v251_v4 = vmul.f32 %v250_v52, %v245_v57  ;;  %v252_v5 = vmul.f32 %v250_v52, %v246_v58 }
  0x5f   :  { %1676 = vmatprep.subr.bf16.mxu1 %v1794_v22  ;;  %v263_v6 = vmul.f32 %v262_v53, %v2163_v59  ;;  %vm176_vm0 = vmxor %vm114_vm5, %vm1982_vm7  ;;  %v243_v7 = vmul.f32 %v241_v0, %v173_v63  ;;  %v244_v8 = vmul.f32 %v242_v1, %v174_v3  ;;  %v264_v9 = vmul.f32 %v262_v53, %v2166_v60  ;;  %v2254_v63 = vld [vmem:[#allocation7 + $0x20] sm:$0xff] }
  0x60   :  { %v268_v10 = vsub.f32 %v2110_v46, %v2114_v48  ;;  %vm177_vm3 = vmand %vm107_vm1, %vm175_vm15  ;;  %v2194_v12 = vsub.f32 %v2112_v47, %v2106_v45  ;;  %v2198_v13 = vsub.f32 %v2114_v48, %v2106_v45  ;;  %v284_v14 = vrot.slane %v2098_v42, %v2090_v37 }
  0x61   :  { %1655 = vmatpush3.bf16.msra.mxu0 %v1795_v23  ;;  %vm178_vm8 = vmand %vm108_vm2, %vm176_vm0  ;;  %v179_v15 = vsel %vm177_vm3, 1.0, %v1983_v62  ;;  %v2207_v16 = vsub.f32 %v2118_v49, %v2112_v47  ;;  %v2211_v17 = vsub.f32 %v2118_v49, %v2114_v48  ;;  %v294_v18 = vrot.slane %v2098_v42, %v2094_v40 }
  0x62   :  { %1677 = vmatpush3.bf16.msra.mxu1 %v1796_v25  ;;  %1656 = vmatprep.subr.bf16.mxu0 %v1797_v26  ;;  %v180_v20 = vsel %vm178_vm8, 1.0, %v1983_v62  ;;  %vm181_vm1 = vmxor %vm119_vm6, %vm1982_vm7  ;;  %v253_v21 = vmul.f32 %v251_v4, %v179_v15  ;;  %v265_v22 = vmul.f32 %v263_v6, %v179_v15  ;;  %v273_v23 = vmul.f32 %v272_v11, %v267_v2 }
  0x63   :  { %1678 = vmatprep.subr.bf16.mxu1 %v1798_v27  ;;  %vm182_vm2 = vmxor %vm120_vm9, %vm1982_vm7  ;;  %v254_v24 = vmul.f32 %v252_v5, %v180_v20  ;;  %v266_v25 = vmul.f32 %v264_v9, %v180_v20  ;;  %v274_v26 = vmul.f32 %v272_v11, %v268_v10  ;;  %v285_v27 = vmul.f32 %v284_v14, %v2194_v12 }
  0x64   :  { %vm183_vm11 = vmand %vm113_vm4, %vm181_vm1  ;;  %v458_v43 = vrot.slane %v2215_v19, %v2090_v37  ;;  %v466_v44 = vrot.slane %v2215_v19, %v2094_v40  ;;  %v476_v45 = vrot.slane %v2215_v19, %v2096_v41  ;;  %v484_v20 = vrot.slane %v2215_v19, %v2120_v50 }
  0x65   :  { %1657 = vmatpush3.bf16.msra.mxu0 %v1799_v28  ;;  %v255_v28 = vadd.f32 %v253_v21, %v243_v7  ;;  %vm184_vm13 = vmand %vm114_vm5, %vm182_vm2 }
  0x66   :  { %1679 = vmatpush3.bf16.msra.mxu1 %v1800_v30  ;;  %1658 = vmatprep.subr.bf16.mxu0 %v1801_v32  ;;  %v286_v30 = vmul.f32 %v284_v14, %v2198_v13  ;;  %v295_v32 = vmul.f32 %v294_v18, %v2207_v16  ;;  %v186_v51 = vsel %vm184_vm13, 1.0, %v1983_v62  ;;  %vm187_vm4 = vmxor %vm125_vm10, %vm1982_vm7  ;;  %v459_v58 = vmul.f32 %v458_v43, %v2149_v55 }
  0x67   :  { %1680 = vmatprep.subr.bf16.mxu1 %v1802_v34  ;;  %v296_v34 = vmul.f32 %v294_v18, %v2211_v17  ;;  %vm188_vm5 = vmxor %vm126_vm12, %vm1982_vm7  ;;  %v467_v1 = vmul.f32 %v466_v44, %v267_v2  ;;  %v468_v3 = vmul.f32 %v466_v44, %v268_v10  ;;  %v477_v4 = vmul.f32 %v476_v45, %v2163_v59 }
  0x68   :  { %v288_v57 = vmul.f32 %v286_v30, %v186_v51  ;;  %vm189_vm14 = vmand %vm119_vm6, %vm187_vm4  ;;  %v461_v7 = vmul.f32 %v459_v58, %v255_v28  ;;  %v478_v2 = vmul.f32 %v476_v45, %v2166_v60  ;;  %v486_v28 = vmul.f32 %v484_v20, %v2211_v17 }
  0x69   :  { %1659 = vmatpush3.bf16.msra.mxu0 %v1803_v36  ;;  %v185_v36 = vsel %vm183_vm11, 1.0, %v1983_v62  ;;  %vm190_vm15 = vmand %vm120_vm9, %vm188_vm5  ;;  %v2264_v5 = vsel %vm189_vm14, 1.0, %v1983_v62  ;;  %v2294_v44 = vrot.slane %v2092_v39, %v2096_v41  ;;  %v2332_v58 = vsub.f32 %v2114_v48, %v2110_v46 }
  0x6a   :  { %1681 = vmatpush3.bf16.msra.mxu1 %v1804_v38  ;;  %1688 = vmatprep.subr.bf16.mxu0 %v1805_v54  ;;  %v256_v38 = vadd.f32 %v254_v24, %v244_v8  ;;  %v275_v52 = vmul.f32 %v273_v23, %v185_v36  ;;  %v287_v53 = vmul.f32 %v285_v27, %v185_v36  ;;  %v2267_v9 = vsel %vm190_vm15, 1.0, %v1983_v62 }
  0x6b   :  { %1710 = vmatprep.subr.bf16.mxu1 %v1807_v61  ;;  %v276_v54 = vmul.f32 %v274_v26, %v186_v51  ;;  %v460_v61 = vmul.f32 %v458_v43, %v2152_v56  ;;  %v297_v11 = vmul.f32 %v295_v32, %v2264_v5  ;;  %v298_v10 = vmul.f32 %v296_v34, %v2267_v9 }
  0x6c   :  { %v277_v0 = vadd.f32 %v275_v52, %v265_v22  ;;  %v620_v24 = vrot.slane %v2254_v63, %v2096_v41  ;;  %v485_v27 = vmul.f32 %v484_v20, %v2207_v16  ;;  %v628_v34 = vrot.slane %v2254_v63, %v2120_v50 }
  0x6d   :  { %v278_v6 = vadd.f32 %v276_v54, %v266_v25  ;;  %v462_v8 = vmul.f32 %v460_v61, %v256_v38  ;;  %v2274_v21 = vadd.f32 %v297_v11, %v287_v53  ;;  %v2278_v25 = vadd.f32 %v298_v10, %v288_v57  ;;  %v2320_v57 = vld [vmem:[#allocation7 + $0x8] sm:$0xff] }
  0x6e   :  { %v469_v14 = vmul.f32 %v467_v1, %v277_v0  ;;  %v479_v18 = vmul.f32 %v477_v4, %v277_v0  ;;  %v621_v30 = vmul.f32 %v620_v24, %v2149_v55  ;;  %v622_v32 = vmul.f32 %v620_v24, %v2152_v56 }
  0x6f   :  { %v470_v15 = vmul.f32 %v468_v3, %v278_v6  ;;  %v480_v23 = vmul.f32 %v478_v2, %v278_v6  ;;  %v2288_v36 = vrot.slane %v2092_v39, %v2094_v40  ;;  %v487_v38 = vmul.f32 %v485_v27, %v2274_v21 }
  0x70   :  { %v471_v22 = vadd.f32 %v469_v14, %v461_v7  ;;  %v488_v43 = vmul.f32 %v486_v28, %v2278_v25  ;;  %v629_v55 = vmul.f32 %v628_v34, %v2207_v16  ;;  %v630_v56 = vmul.f32 %v628_v34, %v2211_v17 }
  0x71   :  { %v472_v26 = vadd.f32 %v470_v15, %v462_v8  ;;  %v2298_v53 = vadd.f32 %v487_v38, %v479_v18  ;;  %vm131_vm6 = vcmp.ge.f32.partialorder %v2112_v47, %v2288_v36  ;;  %vm132_vm9 = vcmp.ge.f32.partialorder %v2114_v48, %v2288_v36 }
  0x72   :  { %v623_v51 = vmul.f32 %v621_v30, %v471_v22  ;;  %v2300_v45 = vadd.f32 %v488_v43, %v480_v23  ;;  %vm137_vm0 = vcmp.ge.f32.partialorder %v2112_v47, %v2294_v44  ;;  %vm138_vm3 = vcmp.ge.f32.partialorder %v2114_v48, %v2294_v44  ;;  %vm193_vm8 = vmxor %vm131_vm6, %vm1982_vm7  ;;  %v2389_v30 = vld [vmem:[#allocation7 + $0x18] sm:$0xff] }
  0x73   :  { %v624_v52 = vmul.f32 %v622_v32, %v472_v26  ;;  %v2312_v16 = vrot.slane %v2092_v39, %v2120_v50  ;;  %v631_v17 = vmul.f32 %v629_v55, %v2298_v53  ;;  %vm194_vm1 = vmxor %vm132_vm9, %vm1982_vm7  ;;  %v2328_v39 = vsub.f32 %v2112_v47, %v2110_v46 }
  0x74   :  { %v632_v54 = vmul.f32 %v630_v56, %v2300_v45  ;;  %vm195_vm2 = vmand %vm125_vm10, %vm193_vm8  ;;  %v306_v61 = vrot.slane %v2098_v42, %v2096_v41  ;;  %v2341_v0 = vsub.f32 %v2288_v36, %v2112_v47  ;;  %v2345_v1 = vsub.f32 %v2288_v36, %v2114_v48 }
  0x75   :  { %v316_v3 = vrot.slane %v2098_v42, %v2120_v50  ;;  %v633_v46 = vadd.f32 %v631_v17, %v623_v51  ;;  %vm196_vm10 = vmand %vm126_vm12, %vm194_vm1  ;;  %v197_v6 = vsel %vm195_vm2, 1.0, %v1983_v62  ;;  %v2355_v7 = vsub.f32 %v2112_v47, %v2118_v49 }
  0x76   :  { %v634_v4 = vadd.f32 %v632_v54, %v624_v52  ;;  %v198_v8 = vsel %vm196_vm10, 1.0, %v1983_v62  ;;  %vm199_vm11 = vmxor %vm137_vm0, %vm1982_vm7  ;;  %v307_v42 = vmul.f32 %v306_v61, %v2328_v39  ;;  %v308_v11 = vmul.f32 %v306_v61, %v2332_v58 }
  0x77   :  { %v317_v14 = vmul.f32 %v316_v3, %v2341_v0  ;;  %vm200_vm12 = vmxor %vm138_vm3, %vm1982_vm7  ;;  %v318_v10 = vmul.f32 %v316_v3, %v2345_v1  ;;  %v2372_v15 = vsub.f32 %v2114_v48, %v2118_v49  ;;  %v328_v18 = vrot.slane %v2320_v57, %v2082_v29 }
  0x78   :  { %v762_v2 = vpack.c.bf16 %v634_v4, %v633_v46  ;;  %vm201_vm13 = vmand %vm131_vm6, %vm199_vm11  ;;  %v309_v20 = vmul.f32 %v307_v42, %v2264_v5  ;;  %v310_v22 = vmul.f32 %v308_v11, %v2267_v9  ;;  %v333_v24 = vsub.f32 %v2294_v44, %v2112_v47 }
  0x79   :  { %v319_v23 = vmul.f32 %v317_v14, %v197_v6  ;;  %vm202_vm4 = vmand %vm132_vm9, %vm200_vm12  ;;  %v203_v49 = vsel %vm201_vm13, 1.0, %v1983_v62  ;;  %v320_v26 = vmul.f32 %v318_v10, %v198_v8  ;;  %v329_v27 = vmul.f32 %v328_v18, %v2355_v7 }
  0x7a   :  { %1378 = vmatprep.mubr.bf16.mxu0 %v762_v2  ;;  %v330_v28 = vmul.f32 %v328_v18, %v2372_v15  ;;  %v204_v5 = vsel %vm202_vm4, 1.0, %v1983_v62  ;;  %v334_v32 = vsub.f32 %v2294_v44, %v2114_v48  ;;  %v338_v34 = vrot.slane %v2320_v57, %v2084_v31  ;;  %v2424_v18 = vld [vmem:[#allocation7 + $0x28] sm:$0xff] }
  0x7b   :  { %v321_v9 = vadd.f32 %v319_v23, %v309_v20  ;;  %vm143_vm5 = vcmp.ge.f32.partialorder %v2112_v47, %v2312_v16  ;;  %v322_v38 = vadd.f32 %v320_v26, %v310_v22  ;;  %v331_v43 = vmul.f32 %v329_v27, %v197_v6 }
  0x7c   :  { %v332_v51 = vmul.f32 %v330_v28, %v198_v8  ;;  %v2400_v52 = vsub.f32 %v2112_v47, %v2288_v36  ;;  %vm144_vm14 = vcmp.ge.f32.partialorder %v2114_v48, %v2312_v16  ;;  %v339_v55 = vmul.f32 %v338_v34, %v333_v24  ;;  %vm2450_vm15 = vmxor %vm143_vm5, %vm1982_vm7 }
  0x7d   :  { %v340_v56 = vmul.f32 %v338_v34, %v334_v32  ;;  %v2406_v17 = vsub.f32 %v2114_v48, %v2288_v36  ;;  %v350_v54 = vrot.slane %v2320_v57, %v2086_v33  ;;  %v494_v61 = vrot.slane %v2389_v30, %v2082_v29  ;;  %vm2461_vm6 = vmxor %vm144_vm14, %vm1982_vm7 }
  0x7e   :  { %v502_v3 = vrot.slane %v2389_v30, %v2084_v31  ;;  %v512_v46 = vrot.slane %v2389_v30, %v2086_v33  ;;  %v520_v4 = vrot.slane %v2389_v30, %v2088_v35  ;;  %v341_v6 = vmul.f32 %v339_v55, %v203_v49  ;;  %vm2477_vm9 = vmand %vm137_vm0, %vm2450_vm15 }
  0x7f   :  { %v342_v8 = vmul.f32 %v340_v56, %v204_v5  ;;  %v351_v36 = vmul.f32 %v350_v54, %v2400_v52  ;;  %v352_v42 = vmul.f32 %v350_v54, %v2406_v17  ;;  %v495_v11 = vmul.f32 %v494_v61, %v2194_v12  ;;  %vm208_vm8 = vmand %vm138_vm3, %vm2461_vm6 }
  0x80   :  { %v496_v14 = vmul.f32 %v494_v61, %v2198_v13  ;;  %v503_v2 = vmul.f32 %v502_v3, %v2341_v0  ;;  %v504_v10 = vmul.f32 %v502_v3, %v2345_v1  ;;  %v2426_v20 = vadd.f32 %v341_v6, %v331_v43 }
  0x81   :  { %v2428_v22 = vadd.f32 %v342_v8, %v332_v51  ;;  %v2430_v23 = vmul.f32 %v351_v36, %v203_v49  ;;  %v2432_v26 = vmul.f32 %v352_v42, %v204_v5  ;;  %v497_v27 = vmul.f32 %v495_v11, %v2274_v21 }
  0x82   :  { %v498_v28 = vmul.f32 %v496_v14, %v2278_v25  ;;  %v505_v34 = vmul.f32 %v503_v2, %v321_v9  ;;  %v506_v55 = vmul.f32 %v504_v10, %v322_v38  ;;  %v513_v56 = vmul.f32 %v512_v46, %v2328_v39 }
  0x83   :  { %v514_v54 = vmul.f32 %v512_v46, %v2332_v58  ;;  %v521_v61 = vmul.f32 %v520_v4, %v333_v24  ;;  %v522_v3 = vmul.f32 %v520_v4, %v334_v32  ;;  %v656_v49 = vrot.slane %v2424_v18, %v2086_v33 }
  0x84   :  { %v507_v43 = vadd.f32 %v505_v34, %v497_v27  ;;  %v508_v6 = vadd.f32 %v506_v55, %v498_v28  ;;  %v664_v5 = vrot.slane %v2424_v18, %v2088_v35  ;;  %v515_v51 = vmul.f32 %v513_v56, %v321_v9  ;;  %v2470_v56 = vld [vmem:[#allocation5 + $0x8] sm:$0xf] }
  0x85   :  { %v516_v21 = vmul.f32 %v514_v54, %v322_v38  ;;  %v523_v25 = vmul.f32 %v521_v61, %v2426_v20  ;;  %v524_v8 = vmul.f32 %v522_v3, %v2428_v22  ;;  %v657_v36 = vmul.f32 %v656_v49, %v2194_v12 }
  0x86   :  { %v658_v46 = vmul.f32 %v656_v49, %v2198_v13  ;;  %v665_v42 = vmul.f32 %v664_v5, %v333_v24  ;;  %v666_v4 = vmul.f32 %v664_v5, %v334_v32  ;;  %v674_v14 = vrot.slane %v2424_v18, %v2090_v37 }
  0x87   :  { %v525_v9 = vadd.f32 %v523_v25, %v515_v51  ;;  %v526_v38 = vadd.f32 %v524_v8, %v516_v21  ;;  %v85_v2 = vsub.f32 0.0, %v2112_v47  ;;  %v659_v13 = vmul.f32 %v657_v36, %v507_v43 }
  0x88   :  { %v660_v24 = vmul.f32 %v658_v46, %v508_v6  ;;  %v86_v32 = vsub.f32 0.0, %v2114_v48  ;;  %v638_v10 = vrot.slane %v2424_v18, %v2082_v29  ;;  %v675_v34 = vmul.f32 %v674_v14, %v2328_v39 }
  0x89   :  { %v667_v27 = vmul.f32 %v665_v42, %v525_v9  ;;  %v668_v28 = vmul.f32 %v666_v4, %v526_v38  ;;  %v676_v55 = vmul.f32 %v674_v14, %v2332_v58  ;;  %v87_v61 = vmul.f32 1.442695, %v85_v2 }
  0x8a   :  { %v89_v3 = vmul.f32 1.442695, %v86_v32  ;;  %v639_v49 = vmul.f32 %v638_v10, %v2163_v59  ;;  %v640_v5 = vmul.f32 %v638_v10, %v2166_v60  ;;  %v2488_v51 = vmul.f32 %v675_v34, %v525_v9  ;;  %v1808_v10 = vld [vmem:[#allocation8 + $0x180] sm:$0xff]  }
  0x8b   :  { %v669_v39 = vadd.f32 %v667_v27, %v659_v13  ;;  %v670_v58 = vadd.f32 %v668_v28, %v660_v24  ;;  %v2490_v21 = vmul.f32 %v676_v55, %v526_v38  ;;  %1845 = vpow2.f32 %v87_v61  ;;  %v1811_v61 = vld [vmem:[#allocation8 + $0x1c8] sm:$0xff]  }
  0x8c   :  { %v641_v25 = vmul.f32 %v639_v49, %v2298_v53  ;;  %v642_v8 = vmul.f32 %v640_v5, %v2300_v45  ;;  %v646_v59 = vrot.slane %v2424_v18, %v2084_v31  ;;  %1847 = vpow2.f32 %v89_v3 }
  0x8d   :  { %v764_v60 = vpack.c.bf16 %v670_v58, %v669_v39  ;;  %v2498_v36 = vrot.slane %v2470_v56, %v2082_v29  ;;  %v209_v46 = vsel %vm2477_vm9, 1.0, %v1983_v62  ;;  %v210_v53 = vsel %vm208_vm8, 1.0, %v1983_v62 }
  0x8e   :  { %v647_v42 = vmul.f32 %v646_v59, %v2341_v0  ;;  %v648_v4 = vmul.f32 %v646_v59, %v2345_v1  ;;  %v2508_v45 = vsub.f32 %v2312_v16, %v2112_v47  ;;  %v2516_v11 = vsub.f32 %v2312_v16, %v2114_v48 }
  0x8f   :  { %1419 = vmatprep.mubr.bf16.mxu1 %v764_v60  ;;  %vm149_vm0 = vcmp.ge.f32.partialorder %v2112_v47, %v2498_v36  ;;  %vm150_vm3 = vcmp.ge.f32.partialorder %v2114_v48, %v2498_v36  ;;  %v360_v0 = vrot.slane %v2320_v57, %v2088_v35  ;;  %v2526_v38 = vsub.f32 %v2112_v47, %v2294_v44 }
  0x90   :  { %v649_v1 = vmul.f32 %v647_v42, %v507_v43  ;;  %v650_v9 = vmul.f32 %v648_v4, %v508_v6  ;;  %vm211_vm1 = vmxor %vm149_vm0, %vm1982_vm7  ;;  %v2530_v14 = vsub.f32 %v2114_v48, %v2294_v44  ;;  %v372_v2 = vrot.slane %v2320_v57, %v2090_v37 }
  0x91   :  { %vm212_vm2 = vmxor %vm150_vm3, %vm1982_vm7  ;;  %v361_v43 = vmul.f32 %v360_v0, %v2508_v45  ;;  %v362_v6 = vmul.f32 %v360_v0, %v2516_v11  ;;  %v2542_v12 = vsub.f32 %v2498_v36, %v2112_v47  ;;  %v2549_v44 = vsub.f32 %v2498_v36, %v2114_v48 }
  0x92   :  { %v651_v13 = vadd.f32 %v649_v1, %v641_v25  ;;  %v652_v24 = vadd.f32 %v650_v9, %v642_v8  ;;  %vm213_vm10 = vmand %vm143_vm5, %vm211_vm1  ;;  %v382_v32 = vrot.slane %v2320_v57, %v2094_v40  ;;  %v373_v55 = vmul.f32 %v372_v2, %v2526_v38 }
  0x93   :  { %vm214_vm11 = vmand %vm144_vm14, %vm212_vm2  ;;  %v2557_v27 = vsel %vm213_vm10, 1.0, %v1983_v62  ;;  %v363_v28 = vmul.f32 %v361_v43, %v209_v46  ;;  %v364_v34 = vmul.f32 %v362_v6, %v210_v53  ;;  %v374_v49 = vmul.f32 %v372_v2, %v2530_v14  ;;  %v1815_v6 = vld [vmem:[#allocation8 + $0x1d0] sm:$0xff]  }
  0x94   :  { %v763_v54 = vpack.c.bf16 %v652_v24, %v651_v13  ;;  %v2561_v3 = vsel %vm214_vm11, 1.0, %v1983_v62  ;;  %v383_v5 = vmul.f32 %v382_v32, %v2542_v12  ;;  %v375_v25 = vmul.f32 %v373_v55, %v209_v46 }
  0x95   :  { %v365_v39 = vadd.f32 %v363_v28, %v2430_v23  ;;  %v366_v58 = vadd.f32 %v364_v34, %v2432_v26  ;;  %v384_v8 = vmul.f32 %v382_v32, %v2549_v44  ;;  %v1846_v59 = vpop.eup %1845  ;;  %v376_v60 = vmul.f32 %v374_v49, %v210_v53  ;;  %v1812_v23 = vld [vmem:[#allocation8 + $0x188] sm:$0xff]  }
  0x96   :  { %1420 = vmatmul.mubr.bf16.vlgmr.msra.gmra.mrb[0].mxu1 %v763_v54  ;;  %v385_v42 = vmul.f32 %v383_v5, %v2557_v27  ;;  %v530_v4 = vrot.slane %v2389_v30, %v2090_v37  ;;  %v538_v0 = vrot.slane %v2389_v30, %v2094_v40  ;;  %v1848_v1 = vpop.eup %1847  ;;  %v91_v9 = vadd.f32 1.0, %v1846_v59  ;;  %v1816_v54 = vld [vmem:[#allocation8 + $0x190] sm:$0xff]  }
  0x97   :  { %1711 = vmatpush3.bf16.msra.mxu1 %v1808_v10  ;;  %v386_v26 = vmul.f32 %v384_v8, %v2561_v3  ;;  %v548_v46 = vrot.slane %v2389_v30, %v2096_v41  ;;  %v556_v53 = vrot.slane %v2389_v30, %v2120_v50  ;;  %v92_v43 = vadd.f32 1.0, %v1848_v1  ;;  %v1819_v8 = vld [vmem:[#allocation8 + $0x1d8] sm:$0xff]  }
  0x98   :  { %1712 = vmatprep.subr.bf16.mxu1 %v1811_v61  ;;  %v2578_v2 = vadd.f32 %v385_v42, %v375_v25  ;;  %v531_v13 = vmul.f32 %v530_v4, %v2355_v7  ;;  %v532_v24 = vmul.f32 %v530_v4, %v2372_v15  ;;  %1849 = vrcp.f32 %v91_v9 }
  0x99   :  { %v2582_v32 = vadd.f32 %v386_v26, %v376_v60  ;;  %v539_v10 = vmul.f32 %v538_v0, %v2508_v45  ;;  %v540_v28 = vmul.f32 %v538_v0, %v2516_v11  ;;  %1851 = vrcp.f32 %v92_v43 }
  0x9a   :  { %v533_v34 = vmul.f32 %v531_v13, %v2426_v20  ;;  %v534_v30 = vmul.f32 %v532_v24, %v2428_v22  ;;  %v549_v55 = vmul.f32 %v548_v46, %v2400_v52  ;;  %v550_v5 = vmul.f32 %v548_v46, %v2406_v17  ;;  %v1820_v46 = vld [vmem:[#allocation8 + $0x198] sm:$0xff]   ;;  %v1823_v13 = vld [vmem:[#allocation8 + $0x1e0] sm:$0xff]  }
  0x9b   :  { %1713 = vmatpush3.bf16.msra.mxu1 %v1812_v23  ;;  %v541_v61 = vmul.f32 %v539_v10, %v365_v39  ;;  %v542_v49 = vmul.f32 %v540_v28, %v366_v58  ;;  %v557_v25 = vmul.f32 %v556_v53, %v2542_v12  ;;  %v558_v60 = vmul.f32 %v556_v53, %v2549_v44 }
  0x9c   :  { %1714 = vmatprep.subr.bf16.mxu1 %v1815_v6  ;;  %v551_v59 = vmul.f32 %v549_v55, %v365_v39  ;;  %v692_v20 = vrot.slane %v2424_v18, %v2096_v41  ;;  %v700_v22 = vrot.slane %v2424_v18, %v2120_v50  ;;  %v552_v0 = vmul.f32 %v550_v5, %v366_v58 }
  0x9d   :  { %v543_v42 = vadd.f32 %v541_v61, %v533_v34  ;;  %v544_v4 = vadd.f32 %v542_v49, %v534_v30  ;;  %v559_v1 = vmul.f32 %v557_v25, %v2578_v2  ;;  %v560_v9 = vmul.f32 %v558_v60, %v2582_v32  ;;  %v1827_v25 = vld [vmem:[#allocation8 + $0x1e8] sm:$0xff]   ;;  %v1813_v34 = vld [vmem:[#allocation8 + $0x150] sm:$0xff]  }
  0x9e   :  { %v693_v23 = vmul.f32 %v692_v20, %v2355_v7  ;;  %v694_v26 = vmul.f32 %v692_v20, %v2372_v15  ;;  %v701_v39 = vmul.f32 %v700_v22, %v2542_v12  ;;  %v702_v43 = vmul.f32 %v700_v22, %v2549_v44 }
  0x9f   :  { %1715 = vmatpush3.bf16.msra.mxu1 %v1816_v54  ;;  %v2601_v53 = vadd.f32 %v559_v1, %v551_v59  ;;  %v682_v6 = vrot.slane %v2424_v18, %v2094_v40  ;;  %v2608_v58 = vrot.slane %v2470_v56, %v2084_v31  ;;  %v2610_v7 = vadd.f32 %v560_v9, %v552_v0  ;;  %v1809_v1 = vld [vmem:[#allocation8 + $0x148] sm:$0xff]  }
  0xa0   :  { %1716 = vmatprep.subr.bf16.mxu1 %v1819_v8  ;;  %v695_v15 = vmul.f32 %v693_v23, %v543_v42  ;;  %v696_v24 = vmul.f32 %v694_v26, %v544_v4  ;;  %v2614_v12 = vrot.slane %v2470_v56, %v2086_v33  ;;  %v2636_v61 = vrot.slane %v2470_v56, %v2088_v35 }
  0xa1   :  { %v703_v10 = vmul.f32 %v701_v39, %v2601_v53  ;;  %v683_v44 = vmul.f32 %v682_v6, %v2508_v45  ;;  %v684_v18 = vmul.f32 %v682_v6, %v2516_v11  ;;  %vm155_vm12 = vcmp.ge.f32.partialorder %v2112_v47, %v2608_v58  ;;  %v1824_v11 = vld [vmem:[#allocation8 + $0x1a0] sm:$0xff]   ;;  %v1831_v39 = vld [vmem:[#allocation8 + $0x1f0] sm:$0xff]  }
  0xa2   :  { %v704_v28 = vmul.f32 %v702_v43, %v2610_v7  ;;  %vm156_vm13 = vcmp.ge.f32.partialorder %v2114_v48, %v2608_v58  ;;  %vm161_vm4 = vcmp.ge.f32.partialorder %v2112_v47, %v2614_v12  ;;  %vm2630_vm5 = vmxor %vm155_vm12, %vm1982_vm7  ;;  %v1850_v45 = vpop.eup %1849  ;;  %vm162_vm15 = vcmp.ge.f32.partialorder %v2114_v48, %v2614_v12 }
  0xa3   :  { %1717 = vmatpush3.bf16.msra.mxu1 %v1820_v46  ;;  %v705_v30 = vadd.f32 %v703_v10, %v695_v15  ;;  %v685_v55 = vmul.f32 %v683_v44, %v543_v42  ;;  %v686_v54 = vmul.f32 %v684_v18, %v544_v4  ;;  %vm218_vm14 = vmxor %vm156_vm13, %vm1982_vm7  ;;  %v1852_v49 = vpop.eup %1851  ;;  %v95_v5 = vmul.f32 %v1850_v45, %v2112_v47  ;;  %v1806_v4 = vld [vmem:[#allocation8 + $0x100] sm:$0xff]   ;;  %v1832_v45 = vld [vmem:[#allocation8 + $0x1b0] sm:$0xff]  }
  0xa4   :  { %1718 = vmatprep.subr.bf16.mxu1 %v1823_v13  ;;  %v706_v8 = vadd.f32 %v704_v28, %v696_v24  ;;  %vm219_vm6 = vmand %vm149_vm0, %vm2630_vm5  ;;  %v2652_v56 = vsub.f32 %v2112_v47, %v2312_v16  ;;  %v96_v59 = vmul.f32 %v1852_v49, %v2114_v48  ;;  %v2670_v42 = vsub.f32 %v2114_v48, %v2312_v16  ;;  %v1828_v16 = vld [vmem:[#allocation8 + $0x1a8] sm:$0xff]   ;;  %v1835_v49 = vld [vmem:[#allocation8 + $0x1f8] sm:$0xff]  }
  0xa5   :  { %v2656_v60 = vadd.f32 %v685_v55, %v2488_v51  ;;  %v2659_v20 = vadd.f32 %v686_v54, %v2490_v21  ;;  %vm2664_vm9 = vmand %vm150_vm3, %vm218_vm14  ;;  %vm167_vm8 = vcmp.ge.f32.partialorder %v2112_v47, %v2636_v61  ;;  %vm168_vm0 = vcmp.ge.f32.partialorder %v2114_v48, %v2636_v61  ;;  %v1810_v24 = vld [vmem:[#allocation8 + $0x108] sm:$0xff]   ;;  %v1817_v15 = vld [vmem:[#allocation8 + $0x158] sm:$0xff]  }
  0xa6   :  { %v766_v0 = vpack.c.bf16 %v706_v8, %v705_v30  ;;  %v221_v51 = vsel %vm219_vm6, 1.0, %v1983_v62  ;;  %vm223_vm3 = vmxor %vm161_vm4, %vm1982_vm7  ;;  %v761_v21 = vpack.c.bf16 %v96_v59, %v95_v5  ;;  %v394_v23 = vrot.slane %v2320_v57, %v2096_v41 }
  0xa7   :  { %1719 = vmatpush3.bf16.msra.mxu1 %v1824_v11  ;;  %v765_v9 = vpack.c.bf16 %v2659_v20, %v2656_v60  ;;  %vm224_vm1 = vmxor %vm162_vm15, %vm1982_vm7  ;;  %v2691_v26 = vsub.f32 %v2608_v58, %v2112_v47  ;;  %v2698_v46 = vsub.f32 %v2608_v58, %v2114_v48  ;;  %v404_v43 = vrot.slane %v2320_v57, %v2120_v50  ;;  %v1841_v60 = vld [vmem:[#allocation8 + $0x220] sm:$0xff]   ;;  %v1842_v20 = vld [vmem:[#allocation8 + $0x228] sm:$0xff]  }
  0xa8   :  { %1720 = vmatprep.subr.bf16.mxu1 %v1827_v25  ;;  %vm225_vm2 = vmand %vm155_vm12, %vm223_vm3  ;;  %v2704_v41 = vsub.f32 %v2112_v47, %v2498_v36  ;;  %v2708_v6 = vsub.f32 %v2114_v48, %v2498_v36  ;;  %1379 = vmatmul.mubr.bf16.vlgmr.msra.gmra.mrb[0].mxu0 %v761_v21  ;;  %v222_v13 = vsel %vm2664_vm9, 1.0, %v1983_v62  ;;  %v395_v50 = vmul.f32 %v394_v23, %v2652_v56  ;;  %v2767_v21 = vld [vmem:[#allocation2 + $0x8] sm:$0xff] }
  0xa9   :  { %vm2716_vm10 = vmand %vm156_vm13, %vm224_vm1  ;;  %v396_v57 = vmul.f32 %v394_v23, %v2670_v42  ;;  %v416_v36 = vrot.slane %v2215_v19, %v2082_v29  ;;  %1689 = vmatpush3.bf16.msra.mxu0 %v1806_v4  ;;  %1460 = vmatprep.mubr.bf16.mxu0 %v766_v0  ;;  %v227_v10 = vsel %vm225_vm2, 1.0, %v1983_v62  ;;  %v405_v44 = vmul.f32 %v404_v43, %v2691_v26  ;;  %v2763_v4 = vld [vmem:[#allocation2] sm:$0xff] }
  0xaa   :  { %vm229_vm11 = vmxor %vm167_vm8, %vm1982_vm7  ;;  %v406_v18 = vmul.f32 %v404_v43, %v2698_v46  ;;  %v2733_v28 = vsub.f32 %v2614_v12, %v2112_v47  ;;  %1690 = vmatprep.subr.bf16.mxu0 %v1809_v1  ;;  %v228_v11 = vsel %vm2716_vm10, 1.0, %v1983_v62  ;;  %v397_v30 = vmul.f32 %v395_v50, %v2557_v27  ;;  %v1836_v50 = vld [vmem:[#allocation8 + $0x1b8] sm:$0xff]  }
  0xab   :  { %1721 = vmatpush3.bf16.msra.mxu1 %v1828_v16  ;;  %v398_v55 = vmul.f32 %v396_v57, %v2561_v3  ;;  %v417_v54 = vmul.f32 %v416_v36, %v2704_v41  ;;  %vm2744_vm12 = vmand %vm161_vm4, %vm229_vm11  ;;  %v407_v25 = vmul.f32 %v405_v44, %v221_v51  ;;  %v418_v59 = vmul.f32 %v416_v36, %v2708_v6  ;;  %v1814_v16 = vld [vmem:[#allocation8 + $0x110] sm:$0xff]  }
  0xac   :  { %1722 = vmatprep.subr.bf16.mxu1 %v1831_v39  ;;  %v408_v8 = vmul.f32 %v406_v18, %v222_v13  ;;  %v2751_v27 = vsub.f32 %v2614_v12, %v2114_v48  ;;  %vm2757_vm13 = vmxor %vm168_vm0, %vm1982_vm7  ;;  %v426_v22 = vrot.slane %v2215_v19, %v2084_v31  ;;  %v433_v0 = vsub.f32 %v2763_v4, %v2608_v58  ;;  %v1818_v48 = vld [vmem:[#allocation8 + $0x118] sm:$0xff]  }
  0xad   :  { %v419_v47 = vmul.f32 %v417_v54, %v221_v51  ;;  %v434_v1 = vsub.f32 %v2767_v21, %v2608_v58  ;;  %1691 = vmatpush3.bf16.msra.mxu0 %v1810_v24  ;;  %v409_v23 = vadd.f32 %v407_v25, %v397_v30  ;;  %v420_v43 = vmul.f32 %v418_v59, %v222_v13  ;;  %vm2787_vm7 = vmand %vm162_vm15, %vm2757_vm13  ;;  %v2797_v12 = vld [vmem:[#allocation7 + $0x30] sm:$0x3f]  ;;  %v1821_v59 = vld [vmem:[#allocation8 + $0x160] sm:$0xff]  }
  0xae   :  { %v410_v39 = vadd.f32 %v408_v8, %v398_v55  ;;  %v438_v51 = vrot.slane %v2215_v19, %v2086_v33  ;;  %1692 = vmatprep.subr.bf16.mxu0 %v1813_v34  ;;  %v427_v57 = vmul.f32 %v426_v22, %v2733_v28  ;;  %v428_v36 = vmul.f32 %v426_v22, %v2751_v27  ;;  %v1825_v19 = vld [vmem:[#allocation8 + $0x168] sm:$0xff]  }
  0xaf   :  { %1723 = vmatpush3.bf16.msra.mxu1 %v1832_v45  ;;  %v566_v44 = vrot.slane %v2254_v63, %v2082_v29  ;;  %v2780_v58 = vsel %vm2744_vm12, 1.0, %v1983_v62  ;;  %v574_v18 = vrot.slane %v2254_v63, %v2084_v31  ;;  %v584_v34 = vrot.slane %v2254_v63, %v2086_v33 }
  0xb0   :  { %1724 = vmatprep.subr.bf16.mxu1 %v1835_v49  ;;  %v439_v13 = vmul.f32 %v438_v51, %v433_v0  ;;  %v440_v24 = vmul.f32 %v438_v51, %v434_v1  ;;  %v429_v45 = vmul.f32 %v427_v57, %v227_v10  ;;  %v430_v30 = vmul.f32 %v428_v36, %v228_v11 }
  0xb1   :  { %v567_v55 = vmul.f32 %v566_v44, %v2526_v38  ;;  %v568_v54 = vmul.f32 %v566_v44, %v2530_v14  ;;  %1693 = vmatpush3.bf16.msra.mxu0 %v1814_v16  ;;  %v575_v25 = vmul.f32 %v574_v18, %v2691_v26  ;;  %v576_v8 = vmul.f32 %v574_v18, %v2698_v46 }
  0xb2   :  { %v2799_v49 = vmul.f32 %v439_v13, %v227_v10  ;;  %v2801_v5 = vmul.f32 %v440_v24, %v228_v11  ;;  %1694 = vmatprep.subr.bf16.mxu0 %v1817_v15  ;;  %v2805_v3 = vadd.f32 %v429_v45, %v419_v47  ;;  %v2807_v22 = vadd.f32 %v430_v30, %v420_v43 }
  0xb3   :  { %1725 = vmatpush3.bf16.msra.mxu1 %v1836_v50  ;;  %v569_v0 = vmul.f32 %v567_v55, %v2578_v2  ;;  %v2813_v10 = vsel %vm2787_vm7, 1.0, %v1983_v62  ;;  %v570_v11 = vmul.f32 %v568_v54, %v2582_v32  ;;  %v577_v1 = vmul.f32 %v575_v25, %v409_v23  ;;  %v1822_v50 = vld [vmem:[#allocation8 + $0x120] sm:$0xff]  }
  0xb4   :  { %v578_v16 = vmul.f32 %v576_v8, %v410_v39  ;;  %v585_v51 = vmul.f32 %v584_v34, %v2652_v56  ;;  %v586_v15 = vmul.f32 %v584_v34, %v2670_v42  ;;  %v592_v47 = vrot.slane %v2254_v63, %v2088_v35 }
  0xb5   :  { %v728_v43 = vrot.slane %v2797_v12, %v2086_v33  ;;  %v736_v2 = vrot.slane %v2797_v12, %v2088_v35  ;;  %1695 = vmatpush3.bf16.msra.mxu0 %v1818_v48  ;;  %v579_v57 = vadd.f32 %v577_v1, %v569_v0  ;;  %v710_v44 = vrot.slane %v2797_v12, %v2082_v29  ;;  %v1826_v48 = vld [vmem:[#allocation8 + $0x128] sm:$0xff]  }
  0xb6   :  { %v580_v36 = vadd.f32 %v578_v16, %v570_v11  ;;  %v587_v32 = vmul.f32 %v585_v51, %v409_v23  ;;  %1696 = vmatprep.subr.bf16.mxu0 %v1821_v59  ;;  %v588_v13 = vmul.f32 %v586_v15, %v410_v39  ;;  %v593_v24 = vmul.f32 %v592_v47, %v2733_v28 }
  0xb7   :  { %v594_v18 = vmul.f32 %v592_v47, %v2751_v27  ;;  %v729_v33 = vmul.f32 %v728_v43, %v2526_v38  ;;  %v730_v34 = vmul.f32 %v728_v43, %v2530_v14  ;;  %v737_v45 = vmul.f32 %v736_v2, %v2733_v28  ;;  %v1833_v47 = vld [vmem:[#allocation8 + $0x178] sm:$0xff]  }
  0xb8   :  { %v738_v30 = vmul.f32 %v736_v2, %v2751_v27  ;;  %v711_v23 = vmul.f32 %v710_v44, %v2400_v52  ;;  %v595_v55 = vmul.f32 %v593_v24, %v2805_v3  ;;  %v712_v39 = vmul.f32 %v710_v44, %v2406_v17  ;;  %v1829_v52 = vld [vmem:[#allocation8 + $0x170] sm:$0xff]   ;;  %v1834_v24 = vld [vmem:[#allocation8 + $0x138] sm:$0xff]  }
  0xb9   :  { %v596_v29 = vmul.f32 %v594_v18, %v2807_v22  ;;  %v731_v54 = vmul.f32 %v729_v33, %v579_v57  ;;  %1697 = vmatpush3.bf16.msra.mxu0 %v1822_v50  ;;  %v732_v25 = vmul.f32 %v730_v34, %v580_v36  ;;  %v718_v14 = vrot.slane %v2797_v12, %v2084_v31 }
  0xba   :  { %v713_v38 = vmul.f32 %v711_v23, %v2601_v53  ;;  %v443_v28 = vsub.f32 %v2636_v61, %v2763_v4  ;;  %1698 = vmatprep.subr.bf16.mxu0 %v1825_v19  ;;  %v597_v27 = vadd.f32 %v595_v55, %v587_v32  ;;  %v714_v59 = vmul.f32 %v712_v39, %v2610_v7  ;;  %v1855_v53 = vld [vmem:[#allocation7 + $0x10] sm:$0xff]  ;;  %v1837_v23 = vld [vmem:[#allocation8 + $0x200] sm:$0xff]  }
  0xbb   :  { %v598_v8 = vadd.f32 %v596_v29, %v588_v13  ;;  %v444_v17 = vsub.f32 %v2636_v61, %v2767_v21  ;;  %v719_v0 = vmul.f32 %v718_v14, %v2691_v26  ;;  %v720_v11 = vmul.f32 %v718_v14, %v2698_v46  ;;  %v1830_v61 = vld [vmem:[#allocation8 + $0x130] sm:$0xff]  }
  0xbc   :  { %v448_v1 = vrot.slane %v1855_v53, %v2088_v35  ;;  %v602_v31 = vrot.slane %v2254_v63, %v2090_v37  ;;  %v739_v4 = vmul.f32 %v737_v45, %v597_v27  ;;  %v610_v51 = vrot.slane %v2254_v63, %v2094_v40 }
  0xbd   :  { %v740_v16 = vmul.f32 %v738_v30, %v598_v8  ;;  %v746_v7 = vrot.slane %v2797_v12, %v2090_v37  ;;  %1699 = vmatpush3.bf16.msra.mxu0 %v1826_v48  ;;  %v721_v21 = vmul.f32 %v719_v0, %v579_v57  ;;  %v722_v26 = vmul.f32 %v720_v11, %v580_v36  ;;  %v1839_v48 = vld [vmem:[#allocation8 + $0x210] sm:$0xff]  }
  0xbe   :  { %v449_v15 = vmul.f32 %v448_v1, %v443_v28  ;;  %v450_v46 = vmul.f32 %v448_v1, %v444_v17  ;;  %1700 = vmatprep.subr.bf16.mxu0 %v1829_v52  ;;  %v741_v35 = vadd.f32 %v739_v4, %v731_v54  ;;  %v603_v2 = vmul.f32 %v602_v31, %v2704_v41 }
  0xbf   :  { %v742_v43 = vadd.f32 %v740_v16, %v732_v25  ;;  %v604_v50 = vmul.f32 %v602_v31, %v2708_v6  ;;  %v723_v32 = vadd.f32 %v721_v21, %v713_v38  ;;  %v724_v44 = vadd.f32 %v722_v26, %v714_v59  ;;  %v1840_v25 = vld [vmem:[#allocation8 + $0x218] sm:$0xff]  }
  0xc0   :  { %v451_v63 = vmul.f32 %v449_v15, %v2780_v58  ;;  %v452_v37 = vmul.f32 %v450_v46, %v2813_v10  ;;  %v605_v57 = vmul.f32 %v603_v2, %v2805_v3  ;;  %v611_v13 = vmul.f32 %v610_v51, %v443_v28  ;;  %v1844_v38 = vld [vmem:[#allocation8 + $0x238] sm:$0xff]  }
  0xc1   :  { %v768_v19 = vpack.c.bf16 %v742_v43, %v741_v35  ;;  %v606_v36 = vmul.f32 %v604_v50, %v2807_v22  ;;  %1701 = vmatpush3.bf16.msra.mxu0 %v1830_v61  ;;  %v767_v18 = vpack.c.bf16 %v724_v44, %v723_v32  ;;  %v612_v6 = vmul.f32 %v610_v51, %v444_v17 }
  0xc2   :  { %v453_v33 = vadd.f32 %v451_v63, %v2799_v49  ;;  %v454_v41 = vadd.f32 %v452_v37, %v2801_v5  ;;  %1702 = vmatprep.subr.bf16.mxu0 %v1833_v47  ;;  %v747_v58 = vmul.f32 %v746_v7, %v2652_v56  ;;  %v748_v10 = vmul.f32 %v746_v7, %v2670_v42 }
  0xc3   :  { %1501 = vmatprep.mubr.bf16.mxu1 %v768_v19  ;;  %v754_v3 = vrot.slane %v2797_v12, %v2094_v40  ;;  %v1838_v40 = vld [vmem:[#allocation8 + $0x208] sm:$0xff]   ;;  %vm1984_vm4 = vmmov 0  }
  0xc4   :  { %1502 = vmatmul.mubr.bf16.vlgmr.msra.gmra.mrb[4].mxu1 %v767_v18  ;;  %v613_v22 = vmul.f32 %v611_v13, %v453_v33  ;;  %v614_v34 = vmul.f32 %v612_v6, %v454_v41  ;;  %v749_v5 = vmul.f32 %v747_v58, %v597_v27  ;;  %v750_v29 = vmul.f32 %v748_v10, %v598_v8 }
  0xc5   :  { %v755_v45 = vmul.f32 %v754_v3, %v443_v28  ;;  %v756_v30 = vmul.f32 %v754_v3, %v444_v17  ;;  %1703 = vmatpush3.bf16.msra.mxu0 %v1834_v24 }
  0xc6   :  { %v615_v49 = vadd.f32 %v613_v22, %v605_v57  ;;  %v616_v55 = vadd.f32 %v614_v34, %v606_v36  ;;  %1741 = vmatprep.subr.bf16.mxu0 %v1983_v62 }
  0xc8   :  { %v757_v54 = vmul.f32 %v755_v45, %v615_v49  ;;  %v758_v56 = vmul.f32 %v756_v30, %v616_v55  ;;  %1461 = vmatmul.mubr.bf16.vlgmr.msra.gmra.mrb[4].mxu0 %v765_v9  ;;  %v1843_v9 = vld [vmem:[#allocation8 + $0x230] sm:$0xff]  }
  0xc9   :  { %1742 = vmatpush3.bf16.msra.mxu0 %v1837_v23  ;;  %1757 = vmatprep.mubr.msk.bf16.mxu0 %vm1984_vm4, %v1983_v62 }
  0xca   :  { %v759_v42 = vadd.f32 %v757_v54, %v749_v5  ;;  %v760_v12 = vadd.f32 %v758_v56, %v750_v29  ;;  %1743 = vmatprep.subr.bf16.mxu0 %v1983_v62 }
  0xcc   :  { %v769_v39 = vpack.c.bf16 %v760_v12, %v759_v42 }
  0xcd   :  { %1744 = vmatpush3.bf16.msra.mxu0 %v1838_v40 }
  0xce   :  { %1745 = vmatprep.subr.bf16.mxu0 %v1983_v62 }
  0xd1   :  { %1746 = vmatpush3.bf16.msra.mxu0 %v1839_v48 }
  0xd2   :  { %1747 = vmatprep.subr.bf16.mxu0 %v1983_v62 }
  0xd5   :  { %1748 = vmatpush3.bf16.msra.mxu0 %v1840_v25 }
  0xd6   :  { %1749 = vmatprep.subr.bf16.mxu0 %v1983_v62 }
  0xd9   :  { %1750 = vmatpush3.bf16.msra.mxu0 %v1841_v60 }
  0xda   :  { %1751 = vmatprep.subr.bf16.mxu0 %v1983_v62 }
  0xdd   :  { %1752 = vmatpush3.bf16.msra.mxu0 %v1842_v20 }
  0xde   :  { %1753 = vmatprep.subr.bf16.mxu0 %v1983_v62 }
  0xe1   :  { %1754 = vmatpush3.bf16.msra.mxu0 %v1843_v9 }
  0xe2   :  { %1755 = vmatprep.subr.bf16.mxu0 %v1983_v62 }
  0xe5   :  { %1756 = vmatpush3.bf16.msra.mxu0 %v1844_v38 }
  0xe8   :  { %1758 = vmatmul.mubr.bf16.vlgmr.msra.gmra.mrb[8].mxu0 %v769_v39 }
 0x169   :  { %v1682_v14 = vpop.f32.mrb[0].mxu1 }
 0x16a   :  { %v1683_v28 = vpop.f32.mrb[1].mxu1 }
 0x16b   :  { %v1684_v52 = vadd.f32 %v1683_v28, %v1682_v14  ;;  %v1685_v27 = vpop.f32.mrb[2].mxu1 }
 0x16c   :  { %v1686_v8 = vpop.f32.mrb[3].mxu1 }
 0x16d   :  { %v1687_v59 = vadd.f32 %v1686_v8, %v1685_v27 }
 0x17b   :  { %v1660_v17 = vpop.f32.mrb[0].mxu0 }
 0x17c   :  { %v1661_v0 = vpop.f32.mrb[1].mxu0 }
 0x17d   :  { %v1662_v11 = vadd.f32 %v1661_v0, %v1660_v17  ;;  %v1663_v53 = vpop.f32.mrb[2].mxu0 }
 0x17e   :  { %v1664_v1 = vpop.f32.mrb[3].mxu0 }
 0x17f   :  { %v1422_v31 = vadd.f32 %v1684_v52, %v1662_v11  ;;  %v1665_v4 = vadd.f32 %v1664_v1, %v1663_v53 }
 0x181   :  { %v1425_v16 = vadd.f32 %v1687_v59, %v1665_v4 }
 0x197   :  { %v1726_v51 = vpop.f32.mrb[4].mxu1 }
 0x198   :  { %v1727_v7 = vpop.f32.mrb[5].mxu1 }
 0x199   :  { %v1728_v61 = vadd.f32 %v1727_v7, %v1726_v51  ;;  %v1729_v62 = vpop.f32.mrb[6].mxu1 }
 0x19a   :  { %v1730_v21 = vpop.f32.mrb[7].mxu1 }
 0x19b   :  { %v1731_v26 = vadd.f32 %v1730_v21, %v1729_v62  ;;  %v1704_v15 = vpop.f32.mrb[4].mxu0 }
 0x19c   :  { %v1705_v46 = vpop.f32.mrb[5].mxu0 }
 0x19d   :  { %v1706_v47 = vadd.f32 %v1705_v46, %v1704_v15  ;;  %v1707_v35 = vpop.f32.mrb[6].mxu0 }
 0x19e   :  { %v1708_v43 = vpop.f32.mrb[7].mxu0 }
 0x19f   :  { %v1463_v2 = vadd.f32 %v1706_v47, %v1422_v31  ;;  %v1709_v50 = vadd.f32 %v1708_v43, %v1707_v35 }
 0x1a1   :  { %v1466_v32 = vadd.f32 %v1709_v50, %v1425_v16  ;;  %v1504_v44 = vadd.f32 %v1728_v61, %v1463_v2 }
 0x1a3   :  { %v1507_v63 = vadd.f32 %v1731_v26, %v1466_v32 }
 0x1bb   :  { %v1544_v37 = vpop.f32.mrb[8].mxu0 }
 0x1bc   :  { %v1545_v19 = vadd.f32 %v1544_v37, %v1504_v44  ;;  %v1759_v57 = vpop.f32.mrb[9].mxu0 }
 0x1bd   :  { %v1547_v36 = vpop.f32.mrb[10].mxu0 }
 0x1be   :  { %1551 = vst [vmem:[#allocation10] sm:$0xff] %v1545_v19  ;;  %v1548_v13 = vadd.f32 %v1547_v36, %v1507_v63  ;;  %v1760_v24 = vpop.f32.mrb[11].mxu0 }
 0x1c0   :  { %1552 = vst [vmem:[#allocation10 + $0x8] sm:$0xff] %v1548_v13 }
 0x1c1   :  { %1955 = shalt.err (!%p1952_p8)
}
 0x1c2   :  { %s1956_s17 = scalar_lea.hbm %s2896_s4, 256 }
 0x1c3   :  { %p1957_p9 = scmp.ne.s32.totalorder %s2896_s4, %s1956_s17  ;;  %p1960_p10 = scmp.lt.u32.totalorder %s1956_s17, %s2896_s4 }
 0x1c5   :  { %p1962_p11 = pnand %p1960_p10, %p1957_p9 }
 0x1c7   :  { %1965 = shalt.err (!%p1962_p11)
}
 0x1c8   :  { %1564 = dma.vmem_to_hbm [thread:$0]  %s1559_s13, 256, %s2896_s4, [#allocation4], %s1976_s27, %s1976_s27, %s1977_s28  }
 0x1c9   :  { %1972 = dma.done.wait [#allocation4], 256  }
 0x1ca   :  { %1973 = vsyncadd [#allocation4], 4294967040 }
 0x1cb   :  { %1568 = vsyncpa [#allocation3], 1 }
 0x1cc   :  { %1569 = vsyncpa [#allocation6], 1 }
 0x1cd   :  { %1570 = vsyncpa [#allocation9], 1 }
 0x1ce   :  { %1571 = vsyncpa [#allocation4], 1 }

</bundles_post_ra>
